<compile_context>
chip_gen: v6e
topology: v6e:2x2x1
jax: 0.10.0
libtpu: 0.0.40
codegen_flags: <defaults>
</compile_context>

<pallas_src>
import numpy as np
import jax
import jax.numpy as jnp
from jax.experimental import pallas as pl
from jax.experimental.pallas import tpu as pltpu


# ----------------------------------------------------------------------------
# Pallas kernel
# ----------------------------------------------------------------------------
def _pose_kernel(scale_ref, phase_ref, x_ref, o_ref):
    """scale/phase: (2*feat_dim, 1) f32; x: (1, in_dim, TN); o: (1, out_dim, TN).

    For each input dim d, output channels [d*2F, (d+1)*2F) are
        sin(scale * x[d] + phase)
    where phase is 0 for even (sin) channels and pi/2 for odd (cos) channels.
    Pure VPU broadcast-FMA + EUP sin; one lane-dense slab store per dim.
    """
    in_dim = x_ref.shape[1]
    two_f = scale_ref.shape[0]
    sc = scale_ref[...]          # (2F, 1)
    ph = phase_ref[...]          # (2F, 1)
    for d in range(in_dim):      # in_dim is tiny (e.g. 3): static unroll
        row = x_ref[0, d:d + 1, :].astype(jnp.float32)        # (1, TN)
        slab = jnp.sin(sc * row + ph)                          # (2F, TN)
        o_ref[0, d * two_f:(d + 1) * two_f, :] = slab.astype(o_ref.dtype)


def _pick_tile_n(n):
    """Largest multiple-of-128 divisor of n, capped at 16384 lanes."""
    assert n % 128 == 0
    m = n // 128
    best = 1
    for k in range(1, min(m, 128) + 1):   # 128 * 128 = 16384 cap
        if m % k == 0:
            best = k
    return 128 * best


def pos_e_initial(xyz, out_dim, alpha, beta, *, tile_n=None, out_dtype=None):
    """Pallas PosE_Initial.  xyz: (B, in_dim, N) -> (B, out_dim, N)."""
    B, in_dim, N = xyz.shape
    assert out_dim % (2 * in_dim) == 0, "out_dim must be divisible by 2*in_dim"
    feat_dim = out_dim // (2 * in_dim)
    two_f = 2 * feat_dim
    out_dtype = xyz.dtype if out_dtype is None else out_dtype

    # Host-side constant folding (alpha/beta are constructor constants, not
    # trainable).  Within each input-dim block, channel j = 2f + p maps to
    #   scale[j] = beta / alpha**(f/feat_dim),  phase[j] = p * pi/2
    # so that sin(scale*x + phase) is sin(div) for p=0 and cos(div) for p=1,
    # matching stack([sin, cos], -1).flatten(3).
    f_idx = np.repeat(np.arange(feat_dim, dtype=np.float32), 2)          # (2F,)
    scale_np = (np.float32(beta)
                / np.power(np.float32(alpha), f_idx / np.float32(feat_dim)))
    phase_np = np.tile(np.array([0.0, np.pi / 2], dtype=np.float32), feat_dim)
    scale = jnp.asarray(scale_np.reshape(two_f, 1))
    phase = jnp.asarray(phase_np.reshape(two_f, 1))

    # Pad N to a multiple of 128 so output stores stay lane-dense.
    n_pad = ((N + 127) // 128) * 128
    x = xyz if n_pad == N else jnp.pad(xyz, ((0, 0), (0, 0), (0, n_pad - N)))

    if tile_n is None:
        tile_n = _pick_tile_n(n_pad)
    assert n_pad % tile_n == 0, "n_pad must be divisible by tile_n"

    out = pl.pallas_call(
        _pose_kernel,
        out_shape=jax.ShapeDtypeStruct((B, out_dim, n_pad), out_dtype),
        grid=(B, n_pad // tile_n),
        in_specs=[
            pl.BlockSpec((two_f, 1), lambda b, n: (0, 0)),
            pl.BlockSpec((two_f, 1), lambda b, n: (0, 0)),
            pl.BlockSpec((1, in_dim, tile_n), lambda b, n: (b, 0, n)),
        ],
        out_specs=pl.BlockSpec((1, out_dim, tile_n), lambda b, n: (b, 0, n)),
        compiler_params=pltpu.CompilerParams(
            dimension_semantics=("parallel", "parallel")),
    )(scale, phase, x)

    if n_pad != N:
        out = out[:, :, :N]
    return out


# ----------------------------------------------------------------------------
# Pure-JAX reference (mirrors the PyTorch forward) for correctness checking
# ----------------------------------------------------------------------------
def pos_e_initial_ref(xyz, out_dim, alpha, beta):
    B, in_dim, N = xyz.shape
    feat_dim = out_dim // (in_dim * 2)
    feat_range = jnp.arange(feat_dim, dtype=jnp.float32)
    dim_embed = jnp.power(jnp.float32(alpha), feat_range / feat_dim)
    div = (beta * xyz[..., None]) / dim_embed                  # (B, in_dim, N, feat_dim)
    pe = jnp.stack([jnp.sin(div), jnp.cos(div)], axis=4)       # (B, in_dim, N, feat_dim, 2)
    pe = pe.reshape(B, in_dim, N, 2 * feat_dim)                # == torch.flatten(3)
    pe = jnp.transpose(pe, (0, 1, 3, 2)).reshape(B, out_dim, N)
    return pe


# ----------------------------------------------------------------------------
if __name__ == "__main__":
    B, in_dim, N = 2, 3, 256
    out_dim, alpha, beta = 72, 1000.0, 100.0

    key = jax.random.PRNGKey(0)
    xyz = jax.random.uniform(key, (B, in_dim, N), jnp.float32,
                             minval=-1.0, maxval=1.0)

    out = pos_e_initial(xyz, out_dim, alpha, beta)
    jax.block_until_ready(out)

    ref = pos_e_initial_ref(xyz, out_dim, alpha, beta)
    assert out.shape == (B, out_dim, N)
    err = float(jnp.max(jnp.abs(out - ref)))
    assert err < 1e-3, f"max abs err {err}"
    print("KERNEL_OK")
</pallas_src>

<mosaic_0001>
module attributes {stable_mosaic.version = 11 : i64} {
  func.func @_pose_kernel(%arg0: i32, %arg1: i32, %arg2: memref<24x1xf32, #tpu.memory_space<vmem>>, %arg3: memref<24x1xf32, #tpu.memory_space<vmem>>, %arg4: memref<1x3x256xf32, #tpu.memory_space<vmem>>, %arg5: memref<1x72x256xf32, #tpu.memory_space<vmem>>) attributes {dimension_semantics = [#tpu.dimension_semantics<parallel>, #tpu.dimension_semantics<parallel>], iteration_bounds = array<i64: 2, 1>, scalar_prefetch = 0 : i64, scratch_operands = 0 : i64, tpu.core_type = #tpu.core_type<tc>, window_params = [{pipeline_mode = #tpu.pipeline_mode<synchronous>, transform_indices = @transform_0, window_bounds = array<i64: 24, 1>}, {pipeline_mode = #tpu.pipeline_mode<synchronous>, transform_indices = @transform_1, window_bounds = array<i64: 24, 1>}, {transform_indices = @transform_2, window_bounds = array<i64: 1, 3, 256>}, {transform_indices = @transform_3, window_bounds = array<i64: 1, 72, 256>}]} {
    %c0 = arith.constant 0 : index
    %c0_0 = arith.constant 0 : index
    %0 = vector.load %arg2[%c0, %c0_0] : memref<24x1xf32, #tpu.memory_space<vmem>>, vector<24x1xf32>
    %c0_1 = arith.constant 0 : index
    %c0_2 = arith.constant 0 : index
    %1 = vector.load %arg3[%c0_1, %c0_2] : memref<24x1xf32, #tpu.memory_space<vmem>>, vector<24x1xf32>
    %c0_3 = arith.constant 0 : index
    %c0_4 = arith.constant 0 : index
    %c0_5 = arith.constant 0 : index
    %2 = vector.load %arg4[%c0_3, %c0_4, %c0_5] : memref<1x3x256xf32, #tpu.memory_space<vmem>>, vector<1x1x256xf32>
    %3 = vector.shape_cast %2 : vector<1x1x256xf32> to vector<1x256xf32>
    %4 = vector.broadcast %0 : vector<24x1xf32> to vector<24x256xf32>
    %5 = vector.broadcast %3 : vector<1x256xf32> to vector<24x256xf32>
    %6 = arith.mulf %4, %5 : vector<24x256xf32>
    %7 = vector.broadcast %1 : vector<24x1xf32> to vector<24x256xf32>
    %8 = arith.addf %6, %7 : vector<24x256xf32>
    %9 = math.sin %8 : vector<24x256xf32>
    %c0_6 = arith.constant 0 : index
    %c0_7 = arith.constant 0 : index
    %c0_8 = arith.constant 0 : index
    %10 = vector.load %arg5[%c0_6, %c0_7, %c0_8] : memref<1x72x256xf32, #tpu.memory_space<vmem>>, vector<1x24x256xf32>
    %11 = vector.shape_cast %10 : vector<1x24x256xf32> to vector<24x256xf32>
    %12 = vector.shape_cast %9 : vector<24x256xf32> to vector<1x24x256xf32>
    tpu.vector_store %arg5[%c0_6, %c0_7, %c0_8], %12 {strides = array<i32>} : memref<1x72x256xf32, #tpu.memory_space<vmem>>, vector<1x24x256xf32>,
    %c0_9 = arith.constant 0 : index
    %c1 = arith.constant 1 : index
    %c0_10 = arith.constant 0 : index
    %13 = vector.load %arg4[%c0_9, %c1, %c0_10] : memref<1x3x256xf32, #tpu.memory_space<vmem>>, vector<1x1x256xf32>
    %14 = vector.shape_cast %13 : vector<1x1x256xf32> to vector<1x256xf32>
    %15 = vector.broadcast %0 : vector<24x1xf32> to vector<24x256xf32>
    %16 = vector.broadcast %14 : vector<1x256xf32> to vector<24x256xf32>
    %17 = arith.mulf %15, %16 : vector<24x256xf32>
    %18 = vector.broadcast %1 : vector<24x1xf32> to vector<24x256xf32>
    %19 = arith.addf %17, %18 : vector<24x256xf32>
    %20 = math.sin %19 : vector<24x256xf32>
    %c0_11 = arith.constant 0 : index
    %c24 = arith.constant 24 : index
    %c0_12 = arith.constant 0 : index
    %21 = vector.load %arg5[%c0_11, %c24, %c0_12] : memref<1x72x256xf32, #tpu.memory_space<vmem>>, vector<1x24x256xf32>
    %22 = vector.shape_cast %21 : vector<1x24x256xf32> to vector<24x256xf32>
    %23 = vector.shape_cast %20 : vector<24x256xf32> to vector<1x24x256xf32>
    tpu.vector_store %arg5[%c0_11, %c24, %c0_12], %23 {strides = array<i32>} : memref<1x72x256xf32, #tpu.memory_space<vmem>>, vector<1x24x256xf32>,
    %c0_13 = arith.constant 0 : index
    %c2 = arith.constant 2 : index
    %c0_14 = arith.constant 0 : index
    %24 = vector.load %arg4[%c0_13, %c2, %c0_14] : memref<1x3x256xf32, #tpu.memory_space<vmem>>, vector<1x1x256xf32>
    %25 = vector.shape_cast %24 : vector<1x1x256xf32> to vector<1x256xf32>
    %26 = vector.broadcast %0 : vector<24x1xf32> to vector<24x256xf32>
    %27 = vector.broadcast %25 : vector<1x256xf32> to vector<24x256xf32>
    %28 = arith.mulf %26, %27 : vector<24x256xf32>
    %29 = vector.broadcast %1 : vector<24x1xf32> to vector<24x256xf32>
    %30 = arith.addf %28, %29 : vector<24x256xf32>
    %31 = math.sin %30 : vector<24x256xf32>
    %c0_15 = arith.constant 0 : index
    %c48 = arith.constant 48 : index
    %c0_16 = arith.constant 0 : index
    %32 = vector.load %arg5[%c0_15, %c48, %c0_16] : memref<1x72x256xf32, #tpu.memory_space<vmem>>, vector<1x24x256xf32>
    %33 = vector.shape_cast %32 : vector<1x24x256xf32> to vector<24x256xf32>
    %34 = vector.shape_cast %31 : vector<24x256xf32> to vector<1x24x256xf32>
    tpu.vector_store %arg5[%c0_15, %c48, %c0_16], %34 {strides = array<i32>} : memref<1x72x256xf32, #tpu.memory_space<vmem>>, vector<1x24x256xf32>,
    return
  }
  func.func @transform_0(%arg0: i32, %arg1: i32) -> (i32, i32) {
    %c0_i32 = arith.constant 0 : i32
    %c0_i32_0 = arith.constant 0 : i32
    %c0_i32_1 = arith.constant 0 : i32
    return %c0_i32, %c0_i32_0 : i32, i32
  }
  func.func @transform_1(%arg0: i32, %arg1: i32) -> (i32, i32) {
    %c0_i32 = arith.constant 0 : i32
    %c0_i32_0 = arith.constant 0 : i32
    %c0_i32_1 = arith.constant 0 : i32
    return %c0_i32, %c0_i32_0 : i32, i32
  }
  func.func @transform_2(%arg0: i32, %arg1: i32) -> (i32, i32, i32) {
    %c0_i32 = arith.constant 0 : i32
    %c0_i32_0 = arith.constant 0 : i32
    return %arg0, %c0_i32, %arg1 : i32, i32, i32
  }
  func.func @transform_3(%arg0: i32, %arg1: i32) -> (i32, i32, i32) {
    %c0_i32 = arith.constant 0 : i32
    %c0_i32_0 = arith.constant 0 : i32
    return %arg0, %c0_i32, %arg1 : i32, i32, i32
  }
}

</mosaic_0001>

<bundles_post_ra>
// kernel: tpu_custom_call.1
= control target key start
LH: loop header
LB: loop body
LE: loop exit
PB: predicated region body
PF: predicated region fallthrough
CT: control target
= control target key end

     0   :  { %8 = vsyncpa [#allocation3], 0  ;;  %s4376_s0 = inlined_call_operand.vmem [shape: f32[24,1], index: 0, kind: input, shape index: {}]   ;;  %s4377_s1 = inlined_call_operand.vmem [shape: f32[24,1], index: 1, kind: input, shape index: {}]   ;;  %s4378_s2 = inlined_call_operand.vmem [shape: f32[2,3,256], index: 2, kind: input, shape index: {}]   ;;  %s4379_s3 = inlined_call_operand.hbm [shape: f32[2,72,256], index: 3, kind: output, shape index: {}]  }
   0x1   :  { %10 = vsyncpa [#allocation3 + $0x1], 0  ;;  %s2700_s12 = smov 0   ;;  %s2702_s13 = smov 0  }
   0x2   :  { %s2704_s14 = smov 0   ;;  %s2706_s15 = smov 0  }
   0x3   :  { %s2708_s16 = smov 0   ;;  %s2710_s17 = smov 0  }
   0x4 LB: > { %s2295_s18 = sadd.s32 4294967295, %s2668_s17   ;;  %s2296_s19 = sadd.s32 4294967294, %s2668_s17   ;;  %s2668_s17 = sphi %s2710_s17, %s16_s17   ;;  %s2664_s16 = sphi %s2708_s16, %s4418_s16   ;;  %s2660_s15 = sphi %s2706_s15, %s4417_s15   ;;  %s2656_s14 = sphi %s2704_s14, %s4416_s14   ;;  %s2652_s13 = sphi %s2702_s13, %s4415_s13   ;;  %s2648_s12 = sphi %s2700_s12, %s4414_s12  }
   0x5   : > { %s28_s20 = sadd.s32 1, %s2664_s16  ;;  %s107_s21 = sadd.s32 1, %s2656_s14 }
   0x6   : > { %p30_p0 = scmp.ge.s32.totalorder %s28_s20, 2  ;;  %p117_p1 = scmp.ne.s32.totalorder %s2656_s14, %s2652_s13 }
   0x7   : > { %p118_p2 = scmp.eq.s32.totalorder %s2295_s18, 1  ;;  %p123_p3 = scmp.ne.s32.totalorder %s2652_s13, %s2648_s12 }
   0x8   : > { %s4420_s20 = smov (%p30_p0, %s28_s20), 0  ;;  %p124_p5 = scmp.eq.s32.totalorder %s2296_s19, 1 }
   0x9   : > { %p2740_p4 = por %p118_p2, %p117_p1  ;;  %s102_s23 = ssub.s32 %s2664_s16, %s4420_s20 }
   0xa   : > { %p2299_p6 = scmp.ge.s32.totalorder %s2668_s17, 1  ;;  %p105_p7 = scmp.eq.s32.totalorder %s102_s23, 0 }
   0xb   : > { %p2747_p8 = por %p124_p5, %p123_p3  ;;  %p161_p9 = scmp.lt.s32.totalorder %s2668_s17, 3 }
   0xc   : > { %s2753_s25 = scalar_select %p105_p7, %s2656_s14, %s107_s21  }
   0xd   : > { %p162_p10 = pnand %p2299_p6, %p161_p9 }
   0xe   : > { %p190_p11 = scmp.lt.s32.totalorder (!%p162_p10), %s2660_s15, 1  ;;  %s186_s26 = sand.u32 (!%p162_p10), 1, %s2652_s13  }
   0xf   : > { %165 = sbr.rel (%p162_p10) target bundleno = 654 (0x28e), region = 32  ;;  %s2677_s8 = smov (!%p162_p10), [#allocation2]  }
  0x10   : > { %s3101_s27 = smul.u32 (!%p162_p10), 144, %s186_s26  ;;  %s2596_s9 = sshll.u32 (!%p162_p10), %s2677_s8, 4  ;;  %s2597_s9 = int_to_ptr.vmem [resolvable:$false] %s2596_s9 }
  0x11   : > { %s2453_s29 = smul.u32 (!%p162_p10), 2304, %s2660_s15  ;;  %s2598_s10 = scalar_lea.vmem (!%p162_p10), %s2597_s9, 4608 }
  0x12   : > { %s3135_s28 = scalar_lea.vmem (!%p162_p10), [#allocation2], %s3101_s27 }
  0x13   : > { %s2216_s30 = sshll.u32 (!%p162_p10), %s3135_s28, 4  ;;  %s4323_s6 = scalar_lea.hbm (!%p162_p10), %s4379_s3, %s2453_s29  ;;  %s4325_s30 = int_to_ptr.vmem [resolvable:$true] %s2216_s30 }
  0x14   : > { %v202_v0 = vld [vmem:[%s4376_s0 + $0x10] sm:$0xff]  ;;  %v200_v1 = vld [vmem:[%s4376_s0] sm:$0xff]  ;;  %v2670_v2 = vmov 0   ;;  %v201_v4 = vld [vmem:[%s4376_s0 + $0x8] sm:$0xff]  ;;  %s191_s11 = scalar_select %p190_p11, %s2660_s15, 1  ;;  %v223_v7 = vlaneseq }
  0x15   : > { %2519 = vset.pattern.permute.xlu1 %v2670_v2  ;;  %2518 = vset.pattern.permute.xlu0 %v2670_v2  ;;  %v203_v3 = vld [vmem:[%s4377_s1] sm:$0xff]  ;;  %v205_v5 = vld [vmem:[%s4377_s1 + $0x10] sm:$0xff]  ;;  %v204_v6 = vld [vmem:[%s4377_s1 + $0x8] sm:$0xff]  ;;  %v2671_v54 = vmov 683565275   ;;  %s4331_s15 = scalar_lea.sflag [#allocation3], %s186_s26  ;;  %p2599_p1 = scmp.lt.s32.totalorder %s4325_s30, %s2597_s9 }
  0x16   : > { %219 = vperm.xlu1 %2519, %v202_v0   ;;  %209 = vperm.xlu0 %2518, %v200_v1   ;;  %s2379_s18 = sshll.u32 %s191_s11, 3  ;;  %v224_v8 = vshrl.u32 %v223_v7, 7  ;;  %v2672_v58 = vmov 2475754826   ;;  %v2673_v60 = vmov 2131351028  }
  0x17   : > { %s2778_s23 = scalar_lea.vmem %s4378_s2, %s2379_s18  ;;  %v2674_v62 = vmov 2102212464   ;;  %v2675_v0 = vmov 920167782   ;;  %v2676_v7 = vmov 1326507024  }
  0x18   : > { %v2780_v9 = vsub.s32 0, %v224_v8  ;;  %v2782_v10 = vsub.s32 1, %v224_v8  ;;  %v206_v11 = vld [vmem:[%s2778_s23] ss:$4 sm:$0x3]  ;;  %s2592_s7 = scalar_lea.vmem %s4325_s30, 2304 }
  0x19   : > { %p2593_p12 = scmp.ne.s32.totalorder %s4325_s30, %s2592_s7  ;;  %p2600_p2 = scmp.lt.s32.totalorder %s2598_s10, %s2592_s7 }
  0x1a   : > { %241 = vperm.xlu1 %2519, %v203_v3   ;;  %214 = vperm.xlu0 %2518, %v201_v4   ;;  %v2786_v12 = vrot.slane %v206_v11, %v2780_v9  ;;  %v2789_v13 = vrot.slane %v206_v11, %v2782_v10 }
  0x1b   : > { %p2594_p13 = pnand %p2593_p12, %p2740_p4  ;;  %p2601_p3 = por %p2600_p2, %p2599_p1 }
  0x1d   : > { %p2595_p0 = pneg %p2594_p13 }
  0x1e   : > { %251 = vperm.xlu1 %2519, %v205_v5   ;;  %246 = vperm.xlu0 %2518, %v204_v6  }
  0x1f   : > { %p2602_p5 = pnand %p2601_p3, %p2595_p0 }
  0x91   : > { %v2791_v14 = vpop.permute.xlu1 %219  ;;  %v2793_v15 = vpop.permute.xlu0 %209 }
  0x92   : > { %v233_v16 = vmul.f32 %v2786_v12, %v2793_v15  ;;  %v234_v17 = vmul.f32 %v2789_v13, %v2793_v15 }
  0x95   : > { %v2799_v18 = vpop.permute.xlu1 %241  ;;  %v2801_v19 = vpop.permute.xlu0 %214 }
  0x96   : > { %v2804_v20 = vadd.f32 %v2799_v18, %v233_v16  ;;  %v2807_v21 = vadd.f32 %v2799_v18, %v234_v17  ;;  %v235_v22 = vmul.f32 %v2786_v12, %v2801_v19  ;;  %v236_v42 = vmul.f32 %v2789_v13, %v2801_v19 }
  0x98   : > { %v260_v23 = vand.u32 2147483647, %v2804_v20  ;;  %v263_v24 = vand.u32 2139095040, %v2804_v20  ;;  %v364_v26 = vand.u32 2147483647, %v2807_v21  ;;  %v367_v27 = vand.u32 2139095040, %v2807_v21 }
  0x99   : > { %v2813_v25 = vpop.permute.xlu0 %246  ;;  %vm262_vm13 = vcmp.lt.s32.totalorder %v2804_v20, 0 }
  0x9a   : > { %v2818_v28 = vadd.f32 %v2813_v25, %v235_v22  ;;  %v264_v29 = vshrl.u32 %v263_v24, 23  ;;  %v368_v30 = vshrl.u32 %v367_v27, 23  ;;  %v267_v31 = vand.u32 8388607, %v260_v23 }
  0x9b   : > { %v371_v32 = vand.u32 8388607, %v364_v26  ;;  %v2829_v46 = vadd.f32 %v2813_v25, %v236_v42  ;;  %vm2955_vm14 = vcmp.le.f32.partialorder %v260_v23, 0.7853982 }
  0x9c   : > { %v2302_v33 = vadd.s32 4294967169, %v264_v29  ;;  %v2306_v34 = vadd.s32 4294967169, %v368_v30  ;;  %v471_v35 = vand.u32 2139095040, %v2818_v28  ;;  %v268_v38 = vor.u32 8388608, %v267_v31 }
  0x9d   : > { %v372_v39 = vor.u32 8388608, %v371_v32  ;;  %v468_v40 = vand.u32 2147483647, %v2818_v28 }
  0x9e   : > { %v270_v36 = vadd.s32 1, %v2302_v33  ;;  %v374_v37 = vadd.s32 1, %v2306_v34  ;;  %v472_v41 = vshrl.u32 %v471_v35, 23  ;;  %v2831_v49 = vshll.u32 %v268_v38, 8 }
  0x9f   : > { %v2835_v51 = vshll.u32 %v372_v39, 8  ;;  %v2839_v52 = vand.u32 8388607, %v468_v40 }
  0xa0   : > { %vm271_vm0 = vcmp.gt.s32.totalorder %v270_v36, 0  ;;  %vm375_vm1 = vcmp.gt.s32.totalorder %v374_v37, 0  ;;  %v2310_v45 = vadd.s32 4294967169, %v472_v41 }
  0xa1   : > { %v272_v43 = vsel %vm271_vm0, %v270_v36, 0  ;;  %v376_v44 = vsel %vm375_vm1, %v374_v37, 0 }
  0xa2   : > { %v273_v47 = vshrl.u32 %v272_v43, 5  ;;  %v274_v48 = vand.u32 31, %v272_v43  ;;  %v2833_v50 = vshrl.u32 %v376_v44, 5  ;;  %v378_v56 = vand.u32 31, %v376_v44 }
  0xa3   : > { %v2842_v57 = vadd.s32 1, %v2310_v45 }
  0xa4   : > { %v275_v53 = vsub.s32 32, %v274_v48  ;;  %v277_v55 = vshll.u32 %v2671_v54, %v274_v48  ;;  %v280_v59 = vshll.u32 %v2672_v58, %v274_v48  ;;  %v283_v61 = vshll.u32 %v2673_v60, %v274_v48 }
  0xa5   : > { %v286_v63 = vshll.u32 %v2674_v62, %v274_v48  ;;  %v289_v1 = vshll.u32 %v2675_v0, %v274_v48  ;;  %vm292_vm2 = vcmp.lt.s32.totalorder %v273_v47, 1  ;;  %vm293_vm3 = vcmp.lt.s32.totalorder %v273_v47, 2 }
  0xa6   : > { %v278_v2 = vshrl.u32 %v2672_v58, %v275_v53  ;;  %v281_v3 = vshrl.u32 %v2673_v60, %v275_v53  ;;  %v284_v4 = vshrl.u32 %v2674_v62, %v275_v53  ;;  %v276_v5 = vshrl.u32 %v2671_v54, %v275_v53 }
  0xa7   : > { %v287_v6 = vshrl.u32 %v2675_v0, %v275_v53  ;;  %v290_v8 = vshrl.u32 %v2676_v7, %v275_v53  ;;  %v379_v22 = vsub.s32 32, %v378_v56  ;;  %vm294_vm4 = vcmp.lt.s32.totalorder %v273_v47, 3 }
  0xa8   : > { %v279_v11 = vor.u32 %v278_v2, %v277_v55  ;;  %v282_v16 = vor.u32 %v281_v3, %v280_v59  ;;  %v285_v17 = vor.u32 %v284_v4, %v283_v61  ;;  %vm295_vm5 = vcmp.lt.s32.totalorder %v273_v47, 4 }
  0xa9   : > { %v288_v24 = vor.u32 %v287_v6, %v286_v63  ;;  %v291_v27 = vor.u32 %v290_v8, %v289_v1  ;;  %v381_v36 = vshll.u32 %v2671_v54, %v378_v56  ;;  %v382_v39 = vshrl.u32 %v2672_v58, %v379_v22 }
  0xaa   : > { %v296_v29 = vsel %vm292_vm2, %v276_v5, %v279_v11  ;;  %v297_v30 = vsel %vm295_vm5, %v285_v17, 2102212464  ;;  %v300_v31 = vsel %vm292_vm2, %v279_v11, %v282_v16  ;;  %v304_v32 = vsel %vm292_vm2, %v282_v16, %v285_v17 }
  0xab   : > { %v298_v33 = vsel %vm294_vm4, %v282_v16, %v297_v30  ;;  %v301_v34 = vsel %vm295_vm5, %v288_v24, 920167782  ;;  %v305_v35 = vsel %vm295_vm5, %v291_v27, 1326507024  ;;  %v384_v41 = vshll.u32 %v2672_v58, %v378_v56 }
  0xac   : > { %v302_v37 = vsel %vm294_vm4, %v285_v17, %v301_v34  ;;  %v306_v38 = vsel %vm294_vm4, %v288_v24, %v305_v35  ;;  %v299_v42 = vsel %vm293_vm3, %v296_v29, %v298_v33  ;;  %v385_v45 = vshrl.u32 %v2673_v60, %v379_v22 }
  0xad   : > { %v303_v43 = vsel %vm293_vm3, %v300_v31, %v302_v37  ;;  %v307_v44 = vsel %vm293_vm3, %v304_v32, %v306_v38  ;;  %v383_v61 = vor.u32 %v382_v39, %v381_v36  ;;  %v387_v1 = vshll.u32 %v2673_v60, %v378_v56 }
  0xae   : > { %v2865_v48 = vmul.u32.u64.low %v2831_v49, %v307_v44  ;;  %v2866_v53 = vmul.u32.u64.high %v2831_v49, %v307_v44, %v2865_v48  ;;  %v2869_v55 = vmul.u32.u64.low %v2831_v49, %v303_v43  ;;  %v2870_v59 = vmul.u32.u64.high %v2831_v49, %v303_v43, %v2869_v55 }
  0xaf   : > { %v386_v63 = vor.u32 %v385_v45, %v384_v41  ;;  %v388_v2 = vshrl.u32 %v2674_v62, %v379_v22  ;;  %v380_v47 = vshrl.u32 %v2671_v54, %v379_v22  ;;  %v390_v3 = vshll.u32 %v2674_v62, %v378_v56 }
  0xb0   : > { %v391_v4 = vshrl.u32 %v2675_v0, %v379_v22  ;;  %v394_v5 = vshrl.u32 %v2676_v7, %v379_v22  ;;  %v315_v6 = vmul.u32 %v2831_v49, %v299_v42  ;;  %v393_v11 = vshll.u32 %v2675_v0, %v378_v56 }
  0xb1   : > { %v389_v8 = vor.u32 %v388_v2, %v387_v1  ;;  %vm396_vm6 = vcmp.lt.s32.totalorder %v2833_v50, 1  ;;  %vm317_vm7 = vc.u32 %v2866_v53, %v2869_v55  ;;  %v318_v16 = vadd.s32 1, %v2870_v59  ;;  %v2908_v1 = vpop.permute.xlu1 %251 }
  0xb2   : > { %v392_v17 = vor.u32 %v391_v4, %v390_v3  ;;  %vm397_vm8 = vcmp.lt.s32.totalorder %v2833_v50, 2  ;;  %v395_v24 = vor.u32 %v394_v5, %v393_v11  ;;  %vm398_vm9 = vcmp.lt.s32.totalorder %v2833_v50, 3 }
  0xb3   : > { %vm399_vm10 = vcmp.lt.s32.totalorder %v2833_v50, 4  ;;  %v404_v22 = vsel %vm396_vm6, %v383_v61, %v386_v63  ;;  %v319_v49 = vsel %vm317_vm7, %v318_v16, %v2870_v59  ;;  %v408_v29 = vsel %vm396_vm6, %v386_v63, %v389_v8 }
  0xb4   : > { %v401_v27 = vsel %vm399_vm10, %v389_v8, 2102212464  ;;  %v405_v56 = vsel %vm399_vm10, %v392_v17, 920167782  ;;  %v320_v30 = vadd.s32 %v319_v49, %v315_v6  ;;  %v400_v31 = vsel %vm396_vm6, %v380_v47, %v383_v61 }
  0xb5   : > { %v406_v32 = vsel %vm398_vm9, %v389_v8, %v405_v56  ;;  %v409_v33 = vsel %vm399_vm10, %v395_v24, 1326507024  ;;  %v402_v34 = vsel %vm398_vm9, %v386_v63, %v401_v27  ;;  %vm479_vm11 = vcmp.gt.s32.totalorder %v2842_v57, 0  ;;  %v2326_v63 = vld [vmem:[%s2778_s23 + $0x1] ss:$4 sm:$0x3] }
  0xb6   : > { %v407_v35 = vsel %vm397_vm8, %v404_v22, %v406_v32  ;;  %v410_v36 = vsel %vm398_vm9, %v392_v17, %v409_v33  ;;  %v321_v37 = vadd.s32 536870912, %v320_v30  ;;  %v480_v44 = vsel %vm479_vm11, %v2842_v57, 0 }
  0xb7   : > { %v411_v38 = vsel %vm397_vm8, %v408_v29, %v410_v36  ;;  %v2895_v39 = vmul.u32.u64.low %v2835_v51, %v407_v35  ;;  %v2896_v41 = vmul.u32.u64.high %v2835_v51, %v407_v35, %v2895_v39  ;;  %v403_v48 = vsel %vm397_vm8, %v400_v31, %v402_v34 }
  0xb8   : > { %v2900_v42 = vmul.u32.u64.low %v2835_v51, %v411_v38  ;;  %v2901_v43 = vmul.u32.u64.high %v2835_v51, %v411_v38, %v2900_v42  ;;  %v322_v45 = vshrl.u32 %v321_v37, 30  ;;  %v482_v59 = vand.u32 31, %v480_v44 }
  0xb9   : > { %v575_v61 = vand.u32 2139095040, %v2829_v46  ;;  %v422_v47 = vadd.s32 1, %v2896_v41  ;;  %v476_v3 = vor.u32 8388608, %v2839_v52  ;;  %v572_v4 = vand.u32 2147483647, %v2829_v46 }
  0xba   : > { %v323_v2 = vshll.u32 %v322_v45, 30  ;;  %v237_v57 = vmul.f32 %v2786_v12, %v2791_v14  ;;  %v419_v5 = vmul.u32 %v2835_v51, %v403_v48  ;;  %vm421_vm12 = vc.u32 %v2901_v43, %v2895_v39 }
  0xbb   : > { %v483_v50 = vsub.s32 32, %v482_v59  ;;  %v423_v8 = vsel %vm421_vm12, %v422_v47, %v2896_v41  ;;  %v576_v11 = vshrl.u32 %v575_v61, 23  ;;  %v2922_v16 = vrot.slane %v2326_v63, %v2780_v9 }
  0xbc   : > { %v2918_v6 = vsub.s32 %v320_v30, %v323_v2  ;;  %v2925_v52 = vadd.f32 %v2908_v1, %v237_v57  ;;  %v424_v12 = vadd.s32 %v423_v8, %v419_v5  ;;  %v2929_v51 = vrot.slane %v2326_v63, %v2782_v10 }
  0xbd   : > { %v316_v17 = vadd.s32 %v2869_v55, %v2866_v53  ;;  %v2934_v22 = vshll.u32 %v476_v3, 8  ;;  %v2938_v49 = vand.u32 8388607, %v572_v4  ;;  %v2940_v56 = vshrl.u32 %v480_v44, 5 }
  0xbe   : > { %v326_v24 = vsub.s32 0, %v2918_v6  ;;  %v425_v27 = vadd.s32 536870912, %v424_v12  ;;  %v486_v29 = vshrl.u32 %v2672_v58, %v483_v50  ;;  %v489_v30 = vshrl.u32 %v2673_v60, %v483_v50 }
  0xbf   : > { %v492_v32 = vshrl.u32 %v2674_v62, %v483_v50  ;;  %v495_v53 = vshrl.u32 %v2675_v0, %v483_v50  ;;  %v2947_v55 = vadd.s32 4294967169, %v576_v11  ;;  %v346_v33 = vsub.s32 4, %v322_v45 }
  0xc0   : > { %v2303_v31 = vmin.u32 %v326_v24, %v2918_v6  ;;  %v2949_v34 = vshrl.u32 %v425_v27, 30  ;;  %v485_v35 = vshll.u32 %v2671_v54, %v482_v59  ;;  %v488_v36 = vshll.u32 %v2672_v58, %v482_v59 }
  0xc1   : > { %v491_v41 = vshll.u32 %v2673_v60, %v482_v59  ;;  %v494_v42 = vshll.u32 %v2674_v62, %v482_v59  ;;  %v498_v44 = vshrl.u32 %v2676_v7, %v483_v50  ;;  %v679_v2 = vand.u32 2139095040, %v2925_v52 }
  0xc2   : > { %v328_v38 = vclz %v2303_v31  ;;  %v427_v48 = vshll.u32 %v2949_v34, 30  ;;  %v487_v61 = vor.u32 %v486_v29, %v485_v35  ;;  %v490_v63 = vor.u32 %v489_v30, %v488_v36 }
  0xc3   : > { %v493_v3 = vor.u32 %v492_v32, %v491_v41  ;;  %v496_v57 = vor.u32 %v495_v53, %v494_v42  ;;  %v497_v23 = vshll.u32 %v2675_v0, %v482_v59  ;;  %v347_v5 = vsel %vm262_vm13, %v346_v33, %v322_v45 }
  0xc4   : > { %v2304_v47 = vadd.s32 4294967294, %v328_v38  ;;  %v2967_v8 = vsub.s32 %v424_v12, %v427_v48  ;;  %v484_v11 = vshrl.u32 %v2671_v54, %v483_v50  ;;  %vm500_vm15 = vcmp.lt.s32.totalorder %v2940_v56, 1 }
  0xc5   : > { %v499_v24 = vor.u32 %v498_v44, %v497_v23  ;;  %vm501_vm1 = vcmp.lt.s32.totalorder %v2940_v56, 2  ;;  %vm502_vm2 = vcmp.lt.s32.totalorder %v2940_v56, 3  ;;  %vm366_vm3 = vcmp.lt.s32.totalorder %v2807_v21, 0 }
  0xc6   : > { %vm2305_vm0 = vcmp.lt.s32.totalorder %v2304_v47, 0  ;;  %v430_v59 = vsub.s32 0, %v2967_v8  ;;  %vm503_vm4 = vcmp.lt.s32.totalorder %v2940_v56, 4  ;;  %v508_v45 = vsel %vm500_vm15, %v487_v61, %v490_v63 }
  0xc7   : > { %v331_v27 = vsel %vm2305_vm0, 0, %v2304_v47  ;;  %v505_v29 = vsel %vm503_vm4, %v493_v3, 2102212464  ;;  %v509_v30 = vsel %vm503_vm4, %v496_v57, 920167782  ;;  %v512_v33 = vsel %vm500_vm15, %v490_v63, %v493_v3 }
  0xc8   : > { %v332_v12 = vsub.s32 32, %v331_v27  ;;  %v336_v50 = vsub.s32 4294967266, %v331_v27  ;;  %v333_v31 = vshll.u32 %v2918_v6, %v331_v27  ;;  %v2307_v32 = vmin.u32 %v430_v59, %v2967_v8 }
  0xc9   : > { %v510_v53 = vsel %vm502_vm2, %v493_v3, %v509_v30  ;;  %v513_v41 = vsel %vm503_vm4, %v499_v24, 1326507024  ;;  %v349_v42 = vsel %vm2955_vm14, 0, %v347_v5  ;;  %vm2990_vm5 = vcmp.le.f32.partialorder %v364_v26, 0.7853982 }
  0xca   : > { %v334_v35 = vshrl.u32 %v316_v17, %v332_v12  ;;  %v337_v36 = vadd.s32 127, %v336_v50  ;;  %v511_v38 = vsel %vm501_vm1, %v508_v45, %v510_v53  ;;  %v432_v44 = vclz %v2307_v32 }
  0xcb   : > { %v504_v48 = vsel %vm500_vm15, %v484_v11, %v487_v61  ;;  %v506_v17 = vsel %vm502_vm2, %v490_v63, %v505_v29  ;;  %v450_v23 = vsub.s32 4, %v2949_v34  ;;  %v514_v5 = vsel %vm502_vm2, %v496_v57, %v513_v41 }
  0xcc   : > { %v335_v47 = vor.u32 %v334_v35, %v333_v31  ;;  %v338_v3 = vshll.u32 %v337_v36, 23  ;;  %v2308_v24 = vadd.s32 4294967294, %v432_v44  ;;  %v515_v26 = vsel %vm501_vm1, %v512_v33, %v514_v5 }
  0xcd   : > { %v3004_v27 = vmul.u32.u64.low %v2934_v22, %v511_v38  ;;  %v3005_v59 = vmul.u32.u64.high %v2934_v22, %v511_v38, %v3004_v27  ;;  %v507_v63 = vsel %vm501_vm1, %v504_v48, %v506_v17  ;;  %v353_v12 = vadd.s32 3, %v349_v42 }
  0xce   : > { %v339_v61 = vor.u32 4788187, %v338_v3  ;;  %v3011_v11 = vmul.u32.u64.low %v2934_v22, %v515_v26  ;;  %v3012_v45 = vmul.u32.u64.high %v2934_v22, %v515_v26, %v3011_v11  ;;  %v420_v57 = vadd.s32 %v2895_v39, %v2901_v43 }
  0xcf   : > { %vm2309_vm6 = vcmp.lt.s32.totalorder %v2308_v24, 0  ;;  %v582_v50 = vadd.s32 1, %v2947_v55  ;;  %v342_v30 = vcvt.s32.f32 %v335_v47  ;;  %v451_v32 = vsel %vm366_vm3, %v450_v23, %v2949_v34 }
  0xd0   : > { %v340_v29 = vand.u32 2147483647, %v339_v61  ;;  %v435_v31 = vsel %vm2309_vm6, 0, %v2308_v24  ;;  %v523_v33 = vmul.u32 %v2934_v22, %v507_v63  ;;  %v526_v35 = vadd.s32 1, %v3005_v59 }
  0xd1   : > { %v436_v56 = vsub.s32 32, %v435_v31  ;;  %v440_v53 = vsub.s32 4294967266, %v435_v31  ;;  %v437_v38 = vshll.u32 %v2967_v8, %v435_v31  ;;  %vm525_vm7 = vc.u32 %v3012_v45, %v3004_v27 }
  0xd2   : > { %v343_v36 = vmul.f32 %v342_v30, %v340_v29  ;;  %vm583_vm8 = vcmp.gt.s32.totalorder %v582_v50, 0  ;;  %v527_v55 = vsel %vm525_vm7, %v526_v35, %v3005_v59  ;;  %v453_v34 = vsel %vm2990_vm5, 0, %v451_v32 }
  0xd3   : > { %v438_v39 = vshrl.u32 %v420_v57, %v436_v56  ;;  %v441_v43 = vadd.s32 127, %v440_v53  ;;  %v584_v41 = vsel %vm583_vm8, %v582_v50, 0  ;;  %v528_v44 = vadd.s32 %v527_v55, %v523_v33 }
  0xd4   : > { %v344_v42 = vxor.u32 2147483648, %v343_v36  ;;  %v586_v22 = vand.u32 31, %v584_v41  ;;  %v3030_v48 = vmul.f32 %v2789_v13, %v2791_v14  ;;  %v580_v47 = vor.u32 8388608, %v2938_v49 }
  0xd5   : > { %v439_v8 = vor.u32 %v438_v39, %v437_v38  ;;  %v442_v17 = vshll.u32 %v441_v43, 23  ;;  %v529_v23 = vadd.s32 536870912, %v528_v44  ;;  %v676_v24 = vand.u32 2147483647, %v2925_v52 }
  0xd6   : > { %v345_v3 = vsel %vm262_vm13, %v344_v42, %v343_v36  ;;  %v587_v5 = vsub.s32 32, %v586_v22  ;;  %v3039_v59 = vand.u32 3, %v353_v12  ;;  %v457_v13 = vadd.s32 3, %v453_v34 }
  0xd7   : > { %v348_v26 = vsel %vm2955_vm14, %v2804_v20, %v345_v3  ;;  %v443_v61 = vor.u32 4788187, %v442_v17  ;;  %v3041_v63 = vshrl.u32 %v529_v23, 30  ;;  %v680_v11 = vshrl.u32 %v679_v2, 23 }
  0xd8   : > { %2520 = vcosq.f32 %v348_v26  ;;  %v590_v49 = vshrl.u32 %v2672_v58, %v587_v5  ;;  %v446_v50 = vcvt.s32.f32 %v439_v8  ;;  %v593_v29 = vshrl.u32 %v2673_v60, %v587_v5 }
  0xd9   : > { %2522 = vsinq.f32 %v348_v26  ;;  %v444_v57 = vand.u32 2147483647, %v443_v61  ;;  %v531_v37 = vshll.u32 %v3041_v63, 30  ;;  %v3048_v30 = vshrl.u32 %v584_v41, 5 }
  0xda   : > { %v589_v12 = vshll.u32 %v2671_v54, %v586_v22  ;;  %v596_v31 = vshrl.u32 %v2674_v62, %v587_v5  ;;  %v592_v56 = vshll.u32 %v2672_v58, %v586_v22  ;;  %v598_v53 = vshll.u32 %v2674_v62, %v586_v22 }
  0xdb   : > { %v447_v32 = vmul.f32 %v446_v50, %v444_v57  ;;  %v599_v2 = vshrl.u32 %v2675_v0, %v587_v5  ;;  %v3055_v33 = vand.u32 3, %v457_v13  ;;  %v3057_v35 = vsub.s32 %v528_v44, %v531_v37 }
  0xdc   : > { %v591_v36 = vor.u32 %v590_v49, %v589_v12  ;;  %v595_v38 = vshll.u32 %v2673_v60, %v586_v22  ;;  %v594_v43 = vor.u32 %v593_v29, %v592_v56  ;;  %v602_v41 = vshrl.u32 %v2676_v7, %v587_v5 }
  0xdd   : > { %v448_v39 = vxor.u32 2147483648, %v447_v32  ;;  %v600_v55 = vor.u32 %v599_v2, %v598_v53  ;;  %v534_v42 = vsub.s32 0, %v3057_v35  ;;  %v601_v8 = vshll.u32 %v2675_v0, %v586_v22 }
  0xde   : > { %v597_v34 = vor.u32 %v596_v31, %v595_v38  ;;  %v3063_v17 = vshll.u32 %v580_v47, 8  ;;  %vm359_vm9 = vcmp.eq.s32.totalorder %v3039_v59, 2  ;;  %v524_v3 = vadd.s32 %v3004_v27, %v3012_v45 }
  0xdf   : > { %v449_v44 = vsel %vm366_vm3, %v448_v39, %v447_v32  ;;  %vm604_vm10 = vcmp.lt.s32.totalorder %v3048_v30, 1  ;;  %v2318_v23 = vadd.s32 4294967169, %v680_v11  ;;  %vm356_vm11 = vcmp.eq.s32.totalorder %v3039_v59, 0 }
  0xe0   : > { %v452_v22 = vsel %vm2990_vm5, %v2807_v21, %v449_v44  ;;  %v2311_v47 = vmin.u32 %v534_v42, %v3057_v35  ;;  %v603_v26 = vor.u32 %v602_v41, %v601_v8  ;;  %vm607_vm12 = vcmp.lt.s32.totalorder %v3048_v30, 4 }
  0xe1   : > { %vm355_vm13 = vcmp.lt.s32.totalorder %v3039_v59, 2  ;;  %2524 = vcosq.f32 %v452_v22  ;;  %v588_v61 = vshrl.u32 %v2671_v54, %v587_v5  ;;  %v612_v27 = vsel %vm604_vm10, %v591_v36, %v594_v43 }
  0xe2   : > { %v613_v45 = vsel %vm607_vm12, %v600_v55, 920167782  ;;  %vm352_vm14 = vweird.f32 %v2804_v20  ;;  %2526 = vsinq.f32 %v452_v22  ;;  %vm470_vm15 = vcmp.lt.s32.totalorder %v2818_v28, 0 }
  0xe3   : > { %v536_v6 = vclz %v2311_v47  ;;  %vm606_vm0 = vcmp.lt.s32.totalorder %v3048_v30, 3  ;;  %v609_v13 = vsel %vm607_vm12, %v597_v34, 2102212464  ;;  %v554_v5 = vsub.s32 4, %v3041_v63 }
  0xe4   : > { %vm605_vm1 = vcmp.lt.s32.totalorder %v3048_v30, 2  ;;  %v614_v49 = vsel %vm606_vm0, %v597_v34, %v613_v45  ;;  %v616_v11 = vsel %vm604_vm10, %v594_v43, %v597_v34  ;;  %v608_v50 = vsel %vm604_vm10, %v588_v61, %v591_v36 }
  0xe5   : > { %v2312_v57 = vadd.s32 4294967294, %v536_v6  ;;  %v615_v29 = vsel %vm605_vm1, %v612_v27, %v614_v49  ;;  %v617_v37 = vsel %vm607_vm12, %v603_v26, 1326507024  ;;  %v2521_v12 = vpop.eup %2520  ;;  %v610_v31 = vsel %vm606_vm0, %v594_v43, %v609_v13 }
  0xe6   : > { %v618_v32 = vsel %vm606_vm0, %v600_v55, %v617_v37  ;;  %v3104_v56 = vmul.u32.u64.low %v3063_v17, %v615_v29  ;;  %v3105_v53 = vmul.u32.u64.high %v3063_v17, %v615_v29, %v3104_v56  ;;  %v2523_v2 = vpop.eup %2522  ;;  %v360_v38 = vxor.u32 2147483648, %v2521_v12 }
  0xe7   : > { %vm2313_vm2 = vcmp.lt.s32.totalorder %v2312_v57, 0  ;;  %v619_v36 = vsel %vm605_vm1, %v616_v11, %v618_v32  ;;  %v686_v39 = vadd.s32 1, %v2318_v23  ;;  %v357_v41 = vxor.u32 2147483648, %v2523_v2 }
  0xe8   : > { %v539_v42 = vsel %vm2313_vm2, 0, %v2312_v57  ;;  %v3111_v34 = vmul.u32.u64.low %v3063_v17, %v619_v36  ;;  %v3112_v8 = vmul.u32.u64.high %v3063_v17, %v619_v36, %v3111_v34  ;;  %v361_v43 = vsel %vm359_vm9, %v360_v38, %v2523_v2 }
  0xe9   : > { %v540_v55 = vsub.s32 32, %v539_v42  ;;  %v544_v44 = vsub.s32 4294967266, %v539_v42  ;;  %v611_v22 = vsel %vm605_vm1, %v608_v50, %v610_v31  ;;  %v358_v47 = vsel %vm356_vm11, %v2521_v12, %v357_v41 }
  0xea   : > { %v541_v26 = vshll.u32 %v3057_v35, %v539_v42  ;;  %v630_v23 = vadd.s32 1, %v3105_v53  ;;  %vm687_vm3 = vcmp.gt.s32.totalorder %v686_v39, 0  ;;  %v362_v61 = vsel %vm355_vm13, %v358_v47, %v361_v43 }
  0xeb   : > { %v542_v27 = vshrl.u32 %v524_v3, %v540_v55  ;;  %v545_v45 = vadd.s32 127, %v544_v44  ;;  %v688_v6 = vsel %vm687_vm3, %v686_v39, 0  ;;  %v363_v13 = vsel %vm352_vm14, nan, %v362_v61 }
  0xec   : > { %vm456_vm4 = vweird.f32 %v2807_v21  ;;  %v555_v30 = vsel %vm470_vm15, %v554_v5, %v3041_v63  ;;  %v627_v35 = vmul.u32 %v3063_v17, %v611_v22  ;;  %vm629_vm5 = vc.u32 %v3112_v8, %v3104_v56  ;;  %884 = vst [vmem:[%s3135_s28] sm:$0xff] %v363_v13 }
  0xed   : > { %v543_v49 = vor.u32 %v542_v27, %v541_v26  ;;  %v546_v59 = vshll.u32 %v545_v45, 23  ;;  %v631_v3 = vsel %vm629_vm5, %v630_v23, %v3105_v53  ;;  %v690_v11 = vand.u32 31, %v688_v6 }
  0xee   : > { %v3140_v20 = vadd.f32 %v2908_v1, %v3030_v48  ;;  %vm459_vm6 = vcmp.lt.s32.totalorder %v3055_v33, 2  ;;  %vm3145_vm7 = vcmp.le.f32.partialorder %v468_v40, 0.7853982  ;;  %v632_v17 = vadd.s32 %v631_v3, %v627_v35  ;;  %v2525_v5 = vpop.eup %2524 }
  0xef   : > { %vm460_vm8 = vcmp.eq.s32.totalorder %v3055_v33, 0  ;;  %vm463_vm9 = vcmp.eq.s32.totalorder %v3055_v33, 2  ;;  %v547_v57 = vor.u32 4788187, %v546_v59  ;;  %v691_v50 = vsub.s32 32, %v690_v11  ;;  %v2527_v29 = vpop.eup %2526 }
  0xf0   : > { %v464_v37 = vxor.u32 2147483648, %v2525_v5  ;;  %v557_v48 = vsel %vm3145_vm7, 0, %v555_v30  ;;  %v633_v12 = vadd.s32 536870912, %v632_v17  ;;  %v683_v40 = vand.u32 8388607, %v676_v24 }
  0xf1   : > { %v461_v31 = vxor.u32 2147483648, %v2527_v29  ;;  %v548_v32 = vand.u32 2147483647, %v547_v57  ;;  %v550_v53 = vcvt.s32.f32 %v543_v49  ;;  %v689_v2 = vshrl.u32 %v688_v6, 5 }
  0xf2   : > { %v465_v38 = vsel %vm463_vm9, %v464_v37, %v2527_v29  ;;  %v3155_v36 = vshrl.u32 %v633_v12, 30  ;;  %v693_v39 = vshll.u32 %v2671_v54, %v690_v11  ;;  %v700_v41 = vshrl.u32 %v2674_v62, %v691_v50 }
  0xf3   : > { %v462_v42 = vsel %vm460_vm8, %v2525_v5, %v461_v31  ;;  %v551_v34 = vmul.f32 %v550_v53, %v548_v32  ;;  %v694_v43 = vshrl.u32 %v2672_v58, %v691_v50  ;;  %v697_v55 = vshrl.u32 %v2673_v60, %v691_v50 }
  0xf4   : > { %v466_v44 = vsel %vm459_vm6, %v462_v42, %v465_v38  ;;  %v635_v22 = vshll.u32 %v3155_v36, 30  ;;  %v696_v47 = vshll.u32 %v2672_v58, %v690_v11  ;;  %v699_v26 = vshll.u32 %v2673_v60, %v690_v11 }
  0xf5   : > { %v467_v23 = vsel %vm456_vm4, nan, %v466_v44  ;;  %v552_v61 = vxor.u32 2147483648, %v551_v34  ;;  %v702_v27 = vshll.u32 %v2674_v62, %v690_v11  ;;  %v703_v45 = vshrl.u32 %v2675_v0, %v691_v50 }
  0xf6   : > { %v3172_v6 = vsub.s32 %v632_v17, %v635_v22  ;;  %v701_v13 = vor.u32 %v700_v41, %v699_v26  ;;  %v705_v33 = vshll.u32 %v2675_v0, %v690_v11  ;;  %v706_v30 = vshrl.u32 %v2676_v7, %v691_v50  ;;  %885 = vst [vmem:[%s3135_s28 + $0x8] sm:$0xff] %v467_v23 }
  0xf7   : > { %v553_v35 = vsel %vm470_vm15, %v552_v61, %v551_v34  ;;  %v695_v49 = vor.u32 %v694_v43, %v693_v39  ;;  %v698_v59 = vor.u32 %v697_v55, %v696_v47  ;;  %v704_v21 = vor.u32 %v703_v45, %v702_v27 }
  0xf8   : > { %v556_v3 = vsel %vm3145_vm7, %v2818_v28, %v553_v35  ;;  %v638_v5 = vsub.s32 0, %v3172_v6  ;;  %v684_v17 = vor.u32 8388608, %v683_v40  ;;  %v707_v57 = vor.u32 %v706_v30, %v705_v33 }
  0xf9   : > { %2528 = vcosq.f32 %v556_v3  ;;  %v561_v29 = vadd.s32 3, %v557_v48  ;;  %vm708_vm10 = vcmp.lt.s32.totalorder %v689_v2, 1  ;;  %vm711_vm11 = vcmp.lt.s32.totalorder %v689_v2, 4 }
  0xfa   : > { %2530 = vsinq.f32 %v556_v3  ;;  %v2315_v11 = vmin.u32 %v638_v5, %v3172_v6  ;;  %v692_v37 = vshrl.u32 %v2671_v54, %v691_v50  ;;  %v713_v12 = vsel %vm711_vm11, %v701_v13, 2102212464 }
  0xfb   : > { %v716_v31 = vsel %vm708_vm10, %v695_v49, %v698_v59  ;;  %v717_v32 = vsel %vm711_vm11, %v704_v21, 920167782  ;;  %v720_v53 = vsel %vm708_vm10, %v698_v59, %v701_v13  ;;  %v721_v38 = vsel %vm711_vm11, %v707_v57, 1326507024 }
  0xfc   : > { %v640_v63 = vclz %v2315_v11  ;;  %vm709_vm12 = vcmp.lt.s32.totalorder %v689_v2, 2  ;;  %vm710_vm13 = vcmp.lt.s32.totalorder %v689_v2, 3  ;;  %v724_v39 = vshll.u32 %v684_v17, 8 }
  0xfd   : > { %v712_v40 = vsel %vm708_vm10, %v692_v37, %v695_v49  ;;  %v714_v41 = vsel %vm710_vm13, %v698_v59, %v713_v12  ;;  %v718_v42 = vsel %vm710_vm13, %v701_v13, %v717_v32  ;;  %v722_v48 = vsel %vm710_vm13, %v704_v21, %v721_v38 }
  0xfe   : > { %v2316_v34 = vadd.s32 4294967294, %v640_v63  ;;  %v658_v43 = vsub.s32 4, %v3155_v36  ;;  %v719_v55 = vsel %vm709_vm12, %v716_v31, %v718_v42  ;;  %v723_v44 = vsel %vm709_vm12, %v720_v53, %v722_v48 }
  0xff   : > { %v3186_v22 = vmul.u32.u64.low %v724_v39, %v723_v44  ;;  %v3187_v50 = vmul.u32.u64.high %v724_v39, %v723_v44, %v3186_v22  ;;  %v3189_v47 = vmul.u32.u64.low %v724_v39, %v719_v55  ;;  %v3190_v26 = vmul.u32.u64.high %v724_v39, %v719_v55, %v3189_v47 }
 0x100   : > { %vm2317_vm14 = vcmp.lt.s32.totalorder %v2316_v34, 0  ;;  %v715_v23 = vsel %vm709_vm12, %v712_v40, %v714_v41  ;;  %v783_v2 = vand.u32 2139095040, %v3140_v20  ;;  %v903_v61 = vmul.f32 %v2922_v16, %v2793_v15 }
 0x101   : > { %v562_v27 = vand.u32 3, %v561_v29  ;;  %vm574_vm15 = vcmp.lt.s32.totalorder %v2829_v46, 0  ;;  %v628_v45 = vadd.s32 %v3104_v56, %v3112_v8  ;;  %v643_v13 = vsel %vm2317_vm14, 0, %v2316_v34 }
 0x102   : > { %v644_v33 = vsub.s32 32, %v643_v13  ;;  %v648_v30 = vsub.s32 4294967266, %v643_v13  ;;  %v659_v35 = vsel %vm574_vm15, %v658_v43, %v3155_v36  ;;  %v784_v49 = vshrl.u32 %v783_v2, 23 }
 0x103   : > { %v731_v59 = vmul.u32 %v724_v39, %v715_v23  ;;  %vm733_vm0 = vc.u32 %v3187_v50, %v3189_v47  ;;  %v734_v21 = vadd.s32 1, %v3190_v26  ;;  %v780_v3 = vand.u32 2147483647, %v3140_v20 }
 0x104   : > { %v645_v5 = vshll.u32 %v3172_v6, %v643_v13  ;;  %v646_v17 = vshrl.u32 %v628_v45, %v644_v33  ;;  %v649_v56 = vadd.s32 127, %v648_v30  ;;  %v2322_v8 = vadd.s32 4294967169, %v784_v49 }
 0x105   : > { %vm563_vm1 = vcmp.lt.s32.totalorder %v562_v27, 2  ;;  %vm3209_vm2 = vcmp.le.f32.partialorder %v572_v4, 0.7853982  ;;  %v735_v36 = vsel %vm733_vm0, %v734_v21, %v3190_v26  ;;  %v3215_v29 = vadd.f32 %v903_v61, %v2799_v18 }
 0x106   : > { %v2529_v11 = vpop.eup %2528  ;;  %v647_v37 = vor.u32 %v646_v17, %v645_v5  ;;  %v650_v12 = vshll.u32 %v649_v56, 23  ;;  %v736_v31 = vadd.s32 %v735_v36, %v731_v59  ;;  %v790_v6 = vadd.s32 1, %v2322_v8 }
 0x107   : > { %v2531_v32 = vpop.eup %2530  ;;  %vm564_vm3 = vcmp.eq.s32.totalorder %v562_v27, 0  ;;  %vm567_vm4 = vcmp.eq.s32.totalorder %v562_v27, 2  ;;  %v568_v53 = vxor.u32 2147483648, %v2529_v11  ;;  %v661_v4 = vsel %vm3209_vm2, 0, %v659_v35 }
 0x108   : > { %v565_v38 = vxor.u32 2147483648, %v2531_v32  ;;  %v651_v63 = vor.u32 4788187, %v650_v12  ;;  %v737_v39 = vadd.s32 536870912, %v736_v31  ;;  %v787_v40 = vand.u32 8388607, %v780_v3 }
 0x109   : > { %v569_v41 = vsel %vm567_vm4, %v568_v53, %v2531_v32  ;;  %v654_v42 = vcvt.s32.f32 %v647_v37  ;;  %vm791_vm5 = vcmp.gt.s32.totalorder %v790_v6, 0  ;;  %v918_v48 = vand.u32 2139095040, %v3215_v29 }
 0x10a   : > { %v566_v34 = vsel %vm564_vm3, %v2529_v11, %v565_v38  ;;  %v652_v43 = vand.u32 2147483647, %v651_v63  ;;  %v3222_v55 = vshrl.u32 %v737_v39, 30  ;;  %v792_v44 = vsel %vm791_vm5, %v790_v6, 0 }
 0x10b   : > { %vm560_vm6 = vweird.f32 %v2818_v28  ;;  %v570_v22 = vsel %vm563_vm1, %v566_v34, %v569_v41  ;;  %v794_v26 = vand.u32 31, %v792_v44  ;;  %v904_v23 = vmul.f32 %v2929_v51, %v2793_v15 }
 0x10c   : > { %v571_v2 = vsel %vm560_vm6, nan, %v570_v22  ;;  %v655_v61 = vmul.f32 %v654_v42, %v652_v43  ;;  %v739_v45 = vshll.u32 %v3222_v55, 30  ;;  %v665_v13 = vadd.s32 3, %v661_v4 }
 0x10d   : > { %v788_v33 = vor.u32 8388608, %v787_v40  ;;  %v795_v30 = vsub.s32 32, %v794_v26  ;;  %886 = vst [vmem:[%s3135_s28 + $0x10] sm:$0xff] %v571_v2  ;;  %v3231_v35 = vadd.f32 %v904_v23, %v2799_v18  ;;  %v3235_v28 = vshrl.u32 %v792_v44, 5 }
 0x10e   : > { %v656_v49 = vxor.u32 2147483648, %v655_v61  ;;  %v3233_v59 = vsub.s32 %v736_v31, %v739_v45  ;;  %v919_v27 = vshrl.u32 %v918_v48, 23  ;;  %v797_v21 = vshll.u32 %v2671_v54, %v794_v26 }
 0x10f   : > { %v798_v5 = vshrl.u32 %v2672_v58, %v795_v30  ;;  %v800_v17 = vshll.u32 %v2672_v58, %v794_v26  ;;  %v801_v56 = vshrl.u32 %v2673_v60, %v795_v30  ;;  %v803_v11 = vshll.u32 %v2673_v60, %v794_v26 }
 0x110   : > { %v657_v8 = vsel %vm574_vm15, %v656_v49, %v655_v61  ;;  %v742_v36 = vsub.s32 0, %v3233_v59  ;;  %v804_v37 = vshrl.u32 %v2674_v62, %v795_v30  ;;  %v806_v6 = vshll.u32 %v2674_v62, %v794_v26 }
 0x111   : > { %v660_v12 = vsel %vm3209_vm2, %v2829_v46, %v657_v8  ;;  %v799_v31 = vor.u32 %v798_v5, %v797_v21  ;;  %v807_v32 = vshrl.u32 %v2675_v0, %v795_v30  ;;  %v802_v4 = vor.u32 %v801_v56, %v800_v17 }
 0x112   : > { %2532 = vcosq.f32 %v660_v12  ;;  %v2319_v53 = vmin.u32 %v742_v36, %v3233_v59  ;;  %v805_v38 = vor.u32 %v804_v37, %v803_v11  ;;  %v809_v39 = vshll.u32 %v2675_v0, %v794_v26 }
 0x113   : > { %2534 = vsinq.f32 %v660_v12  ;;  %v808_v63 = vor.u32 %v807_v32, %v806_v6  ;;  %v810_v40 = vshrl.u32 %v2676_v7, %v795_v30  ;;  %v3254_v41 = vand.u32 3, %v665_v13 }
 0x114   : > { %vm678_vm7 = vcmp.lt.s32.totalorder %v2925_v52, 0  ;;  %v732_v57 = vadd.s32 %v3189_v47, %v3187_v50  ;;  %v744_v42 = vclz %v2319_v53  ;;  %v828_v48 = vshll.u32 %v788_v33, 8 }
 0x115   : > { %v796_v34 = vshrl.u32 %v2671_v54, %v795_v30  ;;  %v811_v43 = vor.u32 %v810_v40, %v809_v39  ;;  %vm812_vm8 = vcmp.lt.s32.totalorder %v3235_v28, 1  ;;  %v2327_v44 = vadd.s32 4294967169, %v919_v27 }
 0x116   : > { %v2320_v22 = vadd.s32 4294967294, %v744_v42  ;;  %vm814_vm9 = vcmp.lt.s32.totalorder %v3235_v28, 3  ;;  %vm815_vm10 = vcmp.lt.s32.totalorder %v3235_v28, 4  ;;  %v820_v26 = vsel %vm812_vm8, %v799_v31, %v802_v4 }
 0x117   : > { %v817_v23 = vsel %vm815_vm10, %v805_v38, 2102212464  ;;  %v821_v2 = vsel %vm815_vm10, %v808_v63, 920167782  ;;  %v824_v50 = vsel %vm812_vm8, %v802_v4, %v805_v38  ;;  %v825_v47 = vsel %vm815_vm10, %v811_v43, 1326507024 }
 0x118   : > { %vm2321_vm11 = vcmp.lt.s32.totalorder %v2320_v22, 0  ;;  %vm813_vm12 = vcmp.lt.s32.totalorder %v3235_v28, 2  ;;  %v822_v61 = vsel %vm814_vm9, %v805_v38, %v821_v2  ;;  %v826_v45 = vsel %vm814_vm9, %v808_v63, %v825_v47 }
 0x119   : > { %v747_v13 = vsel %vm2321_vm11, 0, %v2320_v22  ;;  %v762_v33 = vsub.s32 4, %v3222_v55  ;;  %v823_v30 = vsel %vm813_vm12, %v820_v26, %v822_v61  ;;  %v827_v49 = vsel %vm813_vm12, %v824_v50, %v826_v45 }
 0x11a   : > { %v748_v27 = vsub.s32 32, %v747_v13  ;;  %v752_v21 = vsub.s32 4294967266, %v747_v13  ;;  %v816_v5 = vsel %vm812_vm8, %v796_v34, %v799_v31  ;;  %v818_v17 = vsel %vm814_vm9, %v802_v4, %v817_v23 }
 0x11b   : > { %v3281_v56 = vmul.u32.u64.low %v828_v48, %v827_v49  ;;  %v3282_v8 = vmul.u32.u64.high %v828_v48, %v827_v49, %v3281_v56  ;;  %v3284_v36 = vmul.u32.u64.low %v828_v48, %v823_v30  ;;  %v3285_v11 = vmul.u32.u64.high %v828_v48, %v823_v30, %v3284_v36 }
 0x11c   : > { %vm664_vm13 = vweird.f32 %v2829_v46  ;;  %v749_v37 = vshll.u32 %v3233_v59, %v747_v13  ;;  %v750_v12 = vshrl.u32 %v732_v57, %v748_v27  ;;  %v753_v6 = vadd.s32 127, %v752_v21 }
 0x11d   : > { %v925_v32 = vadd.s32 1, %v2327_v44  ;;  %vm667_vm14 = vcmp.lt.s32.totalorder %v3254_v41, 2  ;;  %vm3293_vm15 = vcmp.le.f32.partialorder %v676_v24, 0.7853982  ;;  %v763_v53 = vsel %vm678_vm7, %v762_v33, %v3222_v55 }
 0x11e   : > { %v819_v4 = vsel %vm813_vm12, %v816_v5, %v818_v17  ;;  %vm668_vm0 = vcmp.eq.s32.totalorder %v3254_v41, 0  ;;  %v751_v59 = vor.u32 %v750_v12, %v749_v37  ;;  %v754_v38 = vshll.u32 %v753_v6, 23 }
 0x11f   : > { %vm926_vm1 = vcmp.gt.s32.totalorder %v925_v32, 0  ;;  %v2533_v63 = vpop.eup %2532  ;;  %vm837_vm2 = vc.u32 %v3282_v8, %v3284_v36  ;;  %v838_v24 = vadd.s32 1, %v3285_v11  ;;  %v915_v39 = vand.u32 2147483647, %v3215_v29 }
 0x120   : > { %v927_v40 = vsel %vm926_vm1, %v925_v32, 0  ;;  %v2535_v57 = vpop.eup %2534  ;;  %v672_v42 = vxor.u32 2147483648, %v2533_v63  ;;  %v755_v55 = vor.u32 4788187, %v754_v38  ;;  %v765_v28 = vsel %vm3293_vm15, 0, %v763_v53 }
 0x121   : > { %v835_v34 = vmul.u32 %v828_v48, %v819_v4  ;;  %v669_v43 = vxor.u32 2147483648, %v2535_v57  ;;  %vm671_vm3 = vcmp.eq.s32.totalorder %v3254_v41, 2  ;;  %v839_v44 = vsel %vm837_vm2, %v838_v24, %v3285_v11 }
 0x122   : > { %v929_v22 = vand.u32 31, %v927_v40  ;;  %v673_v26 = vsel %vm671_vm3, %v672_v42, %v2535_v57  ;;  %v756_v23 = vand.u32 2147483647, %v755_v55  ;;  %v758_v2 = vcvt.s32.f32 %v751_v59 }
 0x123   : > { %v840_v50 = vadd.s32 %v839_v44, %v835_v34  ;;  %v670_v47 = vsel %vm668_vm0, %v2533_v63, %v669_v43  ;;  %v769_v61 = vadd.s32 3, %v765_v28  ;;  %v922_v45 = vand.u32 8388607, %v915_v39 }
 0x124   : > { %v930_v13 = vsub.s32 32, %v929_v22  ;;  %v674_v48 = vsel %vm667_vm14, %v670_v47, %v673_v26  ;;  %v759_v33 = vmul.f32 %v758_v2, %v756_v23  ;;  %v3317_v49 = vshrl.u32 %v927_v40, 5 }
 0x125   : > { %v841_v30 = vadd.s32 536870912, %v840_v50  ;;  %v675_v27 = vsel %vm664_vm13, nan, %v674_v48  ;;  %v932_v21 = vshll.u32 %v2671_v54, %v929_v22  ;;  %v935_v41 = vshll.u32 %v2672_v58, %v929_v22 }
 0x126   : > { %v933_v5 = vshrl.u32 %v2672_v58, %v930_v13  ;;  %v936_v17 = vshrl.u32 %v2673_v60, %v930_v13  ;;  %v760_v56 = vxor.u32 2147483648, %v759_v33  ;;  %887 = vst [vmem:[%s3135_s28 + $0x18] sm:$0xff] %v675_v27  ;;  %v939_v37 = vshrl.u32 %v2674_v62, %v930_v13 }
 0x127   : > { %v3324_v11 = vshrl.u32 %v841_v30, 30  ;;  %v938_v6 = vshll.u32 %v2673_v60, %v929_v22  ;;  %v941_v46 = vshll.u32 %v2674_v62, %v929_v22  ;;  %v942_v32 = vshrl.u32 %v2675_v0, %v930_v13 }
 0x128   : > { %v934_v12 = vor.u32 %v933_v5, %v932_v21  ;;  %v761_v53 = vsel %vm678_vm7, %v760_v56, %v759_v33  ;;  %v937_v59 = vor.u32 %v936_v17, %v935_v41  ;;  %v944_v38 = vshll.u32 %v2675_v0, %v929_v22 }
 0x129   : > { %v843_v4 = vshll.u32 %v3324_v11, 30  ;;  %v764_v63 = vsel %vm3293_vm15, %v2925_v52, %v761_v53  ;;  %v940_v24 = vor.u32 %v939_v37, %v938_v6  ;;  %v943_v40 = vor.u32 %v942_v32, %v941_v46 }
 0x12a   : > { %v945_v57 = vshrl.u32 %v2676_v7, %v930_v13  ;;  %2536 = vcosq.f32 %v764_v63  ;;  %v905_v55 = vmul.f32 %v2922_v16, %v2801_v19  ;;  %v3344_v28 = vand.u32 3, %v769_v61 }
 0x12b   : > { %v3340_v42 = vsub.s32 %v840_v50, %v843_v4  ;;  %2538 = vsinq.f32 %v764_v63  ;;  %v923_v34 = vor.u32 8388608, %v922_v45  ;;  %vm947_vm4 = vcmp.lt.s32.totalorder %v3317_v49, 1 }
 0x12c   : > { %v946_v43 = vor.u32 %v945_v57, %v944_v38  ;;  %vm950_vm5 = vcmp.lt.s32.totalorder %v3317_v49, 4  ;;  %v1022_v31 = vand.u32 2139095040, %v3231_v35  ;;  %vm949_vm6 = vcmp.lt.s32.totalorder %v3317_v49, 3 }
 0x12d   : > { %v846_v44 = vsub.s32 0, %v3340_v42  ;;  %v952_v22 = vsel %vm950_vm5, %v940_v24, 2102212464  ;;  %v955_v26 = vsel %vm947_vm4, %v934_v12, %v937_v59  ;;  %v956_v23 = vsel %vm950_vm5, %v943_v40, 920167782 }
 0x12e   : > { %v931_v50 = vshrl.u32 %v2671_v54, %v930_v13  ;;  %vm948_vm7 = vcmp.lt.s32.totalorder %v3317_v49, 2  ;;  %v957_v47 = vsel %vm949_vm6, %v940_v24, %v956_v23  ;;  %v959_v45 = vsel %vm947_vm4, %v937_v59, %v940_v24 }
 0x12f   : > { %v2323_v2 = vmin.u32 %v846_v44, %v3340_v42  ;;  %v958_v61 = vsel %vm948_vm7, %v955_v26, %v957_v47  ;;  %v960_v48 = vsel %vm950_vm5, %v946_v43, 1326507024  ;;  %v963_v33 = vshll.u32 %v923_v34, 8 }
 0x130   : > { %vm3364_vm8 = vcmp.le.f32.partialorder %v780_v3, 0.7853982  ;;  %vm782_vm9 = vcmp.lt.s32.totalorder %v3140_v20, 0  ;;  %v951_v27 = vsel %vm947_vm4, %v931_v50, %v934_v12  ;;  %v953_v21 = vsel %vm949_vm6, %v937_v59, %v952_v22 }
 0x131   : > { %v848_v13 = vclz %v2323_v2  ;;  %v961_v5 = vsel %vm949_vm6, %v943_v40, %v960_v48  ;;  %v3375_v17 = vmul.u32.u64.low %v963_v33, %v958_v61  ;;  %v3376_v56 = vmul.u32.u64.high %v963_v33, %v958_v61, %v3375_v17 }
 0x132   : > { %v1023_v3 = vshrl.u32 %v1022_v31, 23  ;;  %v866_v37 = vsub.s32 4, %v3324_v11  ;;  %v3381_v6 = vadd.f32 %v905_v55, %v2813_v25  ;;  %v962_v12 = vsel %vm948_vm7, %v959_v45, %v961_v5 }
 0x133   : > { %v2324_v41 = vadd.s32 4294967294, %v848_v13  ;;  %vm771_vm10 = vcmp.lt.s32.totalorder %v3344_v28, 2  ;;  %v3386_v46 = vmul.u32.u64.low %v963_v33, %v962_v12  ;;  %v3387_v32 = vmul.u32.u64.high %v963_v33, %v962_v12, %v3386_v46 }
 0x134   : > { %v2331_v53 = vadd.s32 4294967169, %v1023_v3  ;;  %vm772_vm11 = vcmp.eq.s32.totalorder %v3344_v28, 0  ;;  %vm775_vm12 = vcmp.eq.s32.totalorder %v3344_v28, 2  ;;  %v954_v4 = vsel %vm948_vm7, %v951_v27, %v953_v21 }
 0x135   : > { %vm2325_vm13 = vcmp.lt.s32.totalorder %v2324_v41, 0  ;;  %v973_v38 = vadd.s32 1, %v3376_v56  ;;  %v1019_v63 = vand.u32 2147483647, %v3231_v35  ;;  %v836_v40 = vadd.s32 %v3284_v36, %v3282_v8 }
 0x136   : > { %v851_v59 = vsel %vm2325_vm13, 0, %v2324_v41  ;;  %v1029_v24 = vadd.s32 1, %v2331_v53  ;;  %v867_v34 = vsel %vm782_vm9, %v866_v37, %v3324_v11  ;;  %v970_v49 = vmul.u32 %v963_v33, %v954_v4 }
 0x137   : > { %v852_v57 = vsub.s32 32, %v851_v59  ;;  %v856_v55 = vsub.s32 4294967266, %v851_v59  ;;  %v2537_v43 = vpop.eup %2536  ;;  %v853_v44 = vshll.u32 %v3340_v42, %v851_v59  ;;  %vm972_vm14 = vc.u32 %v3387_v32, %v3375_v17 }
 0x138   : > { %vm1030_vm15 = vcmp.gt.s32.totalorder %v1029_v24, 0  ;;  %v2539_v31 = vpop.eup %2538  ;;  %v776_v22 = vxor.u32 2147483648, %v2537_v43  ;;  %v974_v8 = vsel %vm972_vm14, %v973_v38, %v3376_v56  ;;  %v869_v2 = vsel %vm3364_vm8, 0, %v867_v34 }
 0x139   : > { %v854_v26 = vshrl.u32 %v836_v40, %v852_v57  ;;  %v857_v23 = vadd.s32 127, %v856_v55  ;;  %v773_v36 = vxor.u32 2147483648, %v2539_v31  ;;  %v975_v50 = vadd.s32 %v974_v8, %v970_v49 }
 0x13a   : > { %v1031_v11 = vsel %vm1030_vm15, %v1029_v24, 0  ;;  %v777_v42 = vsel %vm775_vm12, %v776_v22, %v2539_v31  ;;  %v1026_v45 = vand.u32 8388607, %v1019_v63  ;;  %v1126_v27 = vand.u32 2139095040, %v3381_v6 }
 0x13b   : > { %v855_v47 = vor.u32 %v854_v26, %v853_v44  ;;  %v858_v61 = vshll.u32 %v857_v23, 23  ;;  %v774_v48 = vsel %vm772_vm11, %v2537_v43, %v773_v36  ;;  %v976_v33 = vadd.s32 536870912, %v975_v50 }
 0x13c   : > { %v1033_v13 = vand.u32 31, %v1031_v11  ;;  %vm768_vm0 = vweird.f32 %v2925_v52  ;;  %v778_v21 = vsel %vm771_vm10, %v774_v48, %v777_v42  ;;  %v3418_v56 = vmul.f32 %v2922_v16, %v2791_v14 }
 0x13d   : > { %v859_v5 = vor.u32 4788187, %v858_v61  ;;  %v779_v3 = vsel %vm768_vm0, nan, %v778_v21  ;;  %v3422_v41 = vmul.f32 %v2929_v51, %v2791_v14  ;;  %v3424_v37 = vshrl.u32 %v976_v33, 30 }
 0x13e   : > { %v1034_v12 = vsub.s32 32, %v1033_v13  ;;  %v862_v53 = vcvt.s32.f32 %v855_v47  ;;  %v3426_v4 = vadd.s32 3, %v869_v2  ;;  %888 = vst [vmem:[%s3135_s28 + $0x20] sm:$0xff] %v779_v3  ;;  %v1027_v52 = vor.u32 8388608, %v1026_v45 }
 0x13f   : > { %v860_v46 = vand.u32 2147483647, %v859_v5  ;;  %v978_v28 = vshll.u32 %v3424_v37, 30  ;;  %v1036_v59 = vshll.u32 %v2671_v54, %v1033_v13  ;;  %v1127_v38 = vshrl.u32 %v1126_v27, 23 }
 0x140   : > { %v1037_v16 = vshrl.u32 %v2672_v58, %v1034_v12  ;;  %v1040_v40 = vshrl.u32 %v2673_v60, %v1034_v12  ;;  %v1043_v57 = vshrl.u32 %v2674_v62, %v1034_v12  ;;  %v1046_v55 = vshrl.u32 %v2675_v0, %v1034_v12 }
 0x141   : > { %v863_v24 = vmul.f32 %v862_v53, %v860_v46  ;;  %v3435_v34 = vsub.s32 %v975_v50, %v978_v28  ;;  %v1032_v43 = vshrl.u32 %v1031_v11, 5  ;;  %v1039_v44 = vshll.u32 %v2672_v58, %v1033_v13 }
 0x142   : > { %v1042_v49 = vshll.u32 %v2673_v60, %v1033_v13  ;;  %v1038_v22 = vor.u32 %v1037_v16, %v1036_v59  ;;  %v1045_v26 = vshll.u32 %v2674_v62, %v1033_v13  ;;  %v1048_v23 = vshll.u32 %v2675_v0, %v1033_v13 }
 0x143   : > { %v864_v31 = vxor.u32 2147483648, %v863_v24  ;;  %v981_v8 = vsub.s32 0, %v3435_v34  ;;  %v1041_v36 = vor.u32 %v1040_v40, %v1039_v44  ;;  %v1049_v42 = vshrl.u32 %v2676_v7, %v1034_v12 }
 0x144   : > { %v1044_v2 = vor.u32 %v1043_v57, %v1042_v49  ;;  %v1047_v11 = vor.u32 %v1046_v55, %v1045_v26  ;;  %v1067_v47 = vshll.u32 %v1027_v52, 8  ;;  %v1123_v61 = vand.u32 2147483647, %v3381_v6 }
 0x145   : > { %v865_v50 = vsel %vm782_vm9, %v864_v31, %v863_v24  ;;  %v2328_v48 = vmin.u32 %v981_v8, %v3435_v34  ;;  %v1050_v33 = vor.u32 %v1049_v42, %v1048_v23  ;;  %v2335_v13 = vadd.s32 4294967169, %v1127_v38 }
 0x146   : > { %v868_v45 = vsel %vm3364_vm8, %v3140_v20, %v865_v50  ;;  %v1001_v27 = vsub.s32 4, %v3424_v37  ;;  %vm1051_vm1 = vcmp.lt.s32.totalorder %v1032_v43, 1  ;;  %vm1054_vm2 = vcmp.lt.s32.totalorder %v1032_v43, 4 }
 0x147   : > { %2540 = vcosq.f32 %v868_v45  ;;  %vm917_vm3 = vcmp.lt.s32.totalorder %v3215_v29, 0  ;;  %v983_v21 = vclz %v2328_v48  ;;  %v1056_v5 = vsel %vm1054_vm2, %v1044_v2, 2102212464 }
 0x148   : > { %2542 = vsinq.f32 %v868_v45  ;;  %v1059_v3 = vsel %vm1051_vm1, %v1038_v22, %v1041_v36  ;;  %v1035_v46 = vshrl.u32 %v2671_v54, %v1034_v12  ;;  %vm1053_vm4 = vcmp.lt.s32.totalorder %v1032_v43, 3 }
 0x149   : > { %v1060_v30 = vsel %vm1054_vm2, %v1047_v11, 920167782  ;;  %v1063_v53 = vsel %vm1051_vm1, %v1041_v36, %v1044_v2  ;;  %v2329_v52 = vadd.s32 4294967294, %v983_v21  ;;  %vm1052_vm5 = vcmp.lt.s32.totalorder %v1032_v43, 2 }
 0x14a   : > { %v1061_v28 = vsel %vm1053_vm4, %v1044_v2, %v1060_v30  ;;  %v1064_v59 = vsel %vm1054_vm2, %v1050_v33, 1326507024  ;;  %v1055_v16 = vsel %vm1051_vm1, %v1035_v46, %v1038_v22  ;;  %v1057_v38 = vsel %vm1053_vm4, %v1041_v36, %v1056_v5 }
 0x14b   : > { %v1062_v24 = vsel %vm1052_vm5, %v1059_v3, %v1061_v28  ;;  %v1065_v40 = vsel %vm1053_vm4, %v1047_v11, %v1064_v59  ;;  %vm2330_vm6 = vcmp.lt.s32.totalorder %v2329_v52, 0  ;;  %v1133_v26 = vadd.s32 1, %v2335_v13 }
 0x14c   : > { %v1066_v57 = vsel %vm1052_vm5, %v1063_v53, %v1065_v40  ;;  %v3455_v55 = vmul.u32.u64.low %v1067_v47, %v1062_v24  ;;  %v3456_v44 = vmul.u32.u64.high %v1067_v47, %v1062_v24, %v3455_v55  ;;  %v986_v12 = vsel %vm2330_vm6, 0, %v2329_v52 }
 0x14d   : > { %v3459_v49 = vmul.u32.u64.low %v1067_v47, %v1066_v57  ;;  %v3460_v31 = vmul.u32.u64.high %v1067_v47, %v1066_v57, %v3459_v49  ;;  %v971_v23 = vadd.s32 %v3375_v17, %v3387_v32  ;;  %v987_v22 = vsub.s32 32, %v986_v12 }
 0x14e   : > { %v991_v8 = vsub.s32 4294967266, %v986_v12  ;;  %v1058_v36 = vsel %vm1052_vm5, %v1055_v16, %v1057_v38  ;;  %v874_v2 = vand.u32 3, %v3426_v4  ;;  %v988_v42 = vshll.u32 %v3435_v34, %v986_v12 }
 0x14f   : > { %v3469_v50 = vand.u32 8388607, %v1123_v61  ;;  %vm1134_vm7 = vcmp.gt.s32.totalorder %v1133_v26, 0  ;;  %v989_v11 = vshrl.u32 %v971_v23, %v987_v22  ;;  %v1077_v48 = vadd.s32 1, %v3456_v44 }
 0x150   : > { %v992_v45 = vadd.s32 127, %v991_v8  ;;  %v1135_v33 = vsel %vm1134_vm7, %v1133_v26, 0  ;;  %vm872_vm8 = vweird.f32 %v3140_v20  ;;  %v1002_v17 = vsel %vm917_vm3, %v1001_v27, %v3424_v37 }
 0x151   : > { %v1074_v32 = vmul.u32 %v1067_v47, %v1058_v36  ;;  %vm1076_vm9 = vc.u32 %v3460_v31, %v3455_v55  ;;  %v1137_v4 = vand.u32 31, %v1135_v33  ;;  %vm3480_vm10 = vcmp.le.f32.partialorder %v915_v39, 0.7853982 }
 0x152   : > { %v990_v43 = vor.u32 %v989_v11, %v988_v42  ;;  %v993_v13 = vshll.u32 %v992_v45, 23  ;;  %v1078_v21 = vsel %vm1076_vm9, %v1077_v48, %v3456_v44  ;;  %vm875_vm11 = vcmp.lt.s32.totalorder %v874_v2, 2 }
 0x153   : > { %vm876_vm12 = vcmp.eq.s32.totalorder %v874_v2, 0  ;;  %v1079_v5 = vadd.s32 %v1078_v21, %v1074_v32  ;;  %v1138_v3 = vsub.s32 32, %v1137_v4  ;;  %vm879_vm13 = vcmp.eq.s32.totalorder %v874_v2, 2 }
 0x154   : > { %v2541_v37 = vpop.eup %2540  ;;  %v994_v47 = vor.u32 4788187, %v993_v13  ;;  %v1004_v27 = vsel %vm3480_vm10, 0, %v1002_v17  ;;  %v1131_v46 = vor.u32 8388608, %v3469_v50  ;;  %v3488_v52 = vshrl.u32 %v1135_v33, 5 }
 0x155   : > { %v2543_v39 = vpop.eup %2542  ;;  %v880_v30 = vxor.u32 2147483648, %v2541_v37  ;;  %v1080_v53 = vadd.s32 536870912, %v1079_v5  ;;  %v1140_v28 = vshll.u32 %v2671_v54, %v1137_v4  ;;  %v997_v38 = vcvt.s32.f32 %v990_v43 }
 0x156   : > { %v877_v59 = vxor.u32 2147483648, %v2543_v39  ;;  %v995_v16 = vand.u32 2147483647, %v994_v47  ;;  %v1143_v24 = vshll.u32 %v2672_v58, %v1137_v4  ;;  %v1141_v44 = vshrl.u32 %v2672_v58, %v1138_v3 }
 0x157   : > { %v881_v40 = vsel %vm879_vm13, %v880_v30, %v2543_v39  ;;  %v3492_v57 = vshrl.u32 %v1080_v53, 30  ;;  %v1147_v12 = vshrl.u32 %v2674_v62, %v1138_v3  ;;  %v1144_v23 = vshrl.u32 %v2673_v60, %v1138_v3 }
 0x158   : > { %v878_v49 = vsel %vm876_vm12, %v2541_v37, %v877_v59  ;;  %v998_v26 = vmul.f32 %v997_v38, %v995_v16  ;;  %v1150_v22 = vshrl.u32 %v2675_v0, %v1138_v3  ;;  %v1146_v42 = vshll.u32 %v2673_v60, %v1137_v4 }
 0x159   : > { %v882_v8 = vsel %vm875_vm11, %v878_v49, %v881_v40  ;;  %v1082_v36 = vshll.u32 %v3492_v57, 30  ;;  %v1149_v50 = vshll.u32 %v2674_v62, %v1137_v4  ;;  %v1152_v48 = vshll.u32 %v2675_v0, %v1137_v4 }
 0x15a   : > { %v883_v11 = vsel %vm872_vm8, nan, %v882_v8  ;;  %v999_v45 = vxor.u32 2147483648, %v998_v26  ;;  %v1153_v33 = vshrl.u32 %v2676_v7, %v1138_v3  ;;  %v906_v17 = vmul.f32 %v2929_v51, %v2801_v19 }
 0x15b   : > { %889 = vst [vmem:[%s3135_s28 + $0x28] sm:$0xff] %v883_v11  ;;  %v3510_v2 = vsub.s32 %v1079_v5, %v1082_v36  ;;  %v1142_v32 = vor.u32 %v1141_v44, %v1140_v28  ;;  %v1148_v43 = vor.u32 %v1147_v12, %v1146_v42  ;;  %v1145_v21 = vor.u32 %v1144_v23, %v1143_v24 }
 0x15c   : > { %v1000_v13 = vsel %vm917_vm3, %v999_v45, %v998_v26  ;;  %v1151_v37 = vor.u32 %v1150_v22, %v1149_v50  ;;  %v1154_v20 = vor.u32 %v1153_v33, %v1152_v48  ;;  %v3515_v47 = vadd.f32 %v906_v17, %v2813_v25 }
 0x15d   : > { %v1003_v4 = vsel %vm3480_vm10, %v3215_v29, %v1000_v13  ;;  %v1008_v39 = vadd.s32 3, %v1004_v27  ;;  %v1085_v51 = vsub.s32 0, %v3510_v2  ;;  %v1139_v5 = vshrl.u32 %v2671_v54, %v1138_v3 }
 0x15e   : > { %2544 = vcosq.f32 %v1003_v4  ;;  %vm1158_vm14 = vcmp.lt.s32.totalorder %v3488_v52, 4  ;;  %v1171_v30 = vshll.u32 %v1131_v46, 8  ;;  %vm1155_vm15 = vcmp.lt.s32.totalorder %v3488_v52, 1 }
 0x15f   : > { %2546 = vsinq.f32 %v1003_v4  ;;  %v2332_v53 = vmin.u32 %v1085_v51, %v3510_v2  ;;  %v1160_v28 = vsel %vm1158_vm14, %v1148_v43, 2102212464  ;;  %v1163_v59 = vsel %vm1155_vm15, %v1142_v32, %v1145_v21 }
 0x160   : > { %v1164_v16 = vsel %vm1158_vm14, %v1151_v37, 920167782  ;;  %v1167_v38 = vsel %vm1155_vm15, %v1145_v21, %v1148_v43  ;;  %v1168_v34 = vsel %vm1158_vm14, %v1154_v20, 1326507024  ;;  %vm1156_vm0 = vcmp.lt.s32.totalorder %v3488_v52, 2 }
 0x161   : > { %v1087_v24 = vclz %v2332_v53  ;;  %vm1157_vm1 = vcmp.lt.s32.totalorder %v3488_v52, 3  ;;  %v1159_v27 = vsel %vm1155_vm15, %v1139_v5, %v1142_v32  ;;  %v1230_v46 = vand.u32 2139095040, %v3515_v47 }
 0x162   : > { %v1161_v3 = vsel %vm1157_vm1, %v1145_v21, %v1160_v28  ;;  %v1165_v40 = vsel %vm1157_vm1, %v1148_v43, %v1164_v16  ;;  %v1169_v44 = vsel %vm1157_vm1, %v1151_v37, %v1168_v34  ;;  %v3530_v12 = vadd.f32 %v3418_v56, %v2908_v1 }
 0x163   : > { %v2333_v49 = vadd.s32 4294967294, %v1087_v24  ;;  %v1166_v26 = vsel %vm1156_vm0, %v1163_v59, %v1165_v40  ;;  %v1170_v23 = vsel %vm1156_vm0, %v1167_v38, %v1169_v44  ;;  %v3541_v52 = vadd.f32 %v3422_v41, %v2908_v1 }
 0x164   : > { %v3532_v22 = vmul.u32.u64.low %v1171_v30, %v1170_v23  ;;  %v3533_v8 = vmul.u32.u64.high %v1171_v30, %v1170_v23, %v3532_v22  ;;  %v3535_v36 = vmul.u32.u64.low %v1171_v30, %v1166_v26  ;;  %v3536_v42 = vmul.u32.u64.high %v1171_v30, %v1166_v26, %v3535_v36 }
 0x165   : > { %vm2334_vm2 = vcmp.lt.s32.totalorder %v2333_v49, 0  ;;  %v1162_v50 = vsel %vm1156_vm0, %v1159_v27, %v1161_v3  ;;  %v1231_v11 = vshrl.u32 %v1230_v46, 23  ;;  %v1009_v45 = vand.u32 3, %v1008_v39 }
 0x166   : > { %vm1021_vm3 = vcmp.lt.s32.totalorder %v3231_v35, 0  ;;  %v1090_v56 = vsel %vm2334_vm2, 0, %v2333_v49  ;;  %v1105_v48 = vsub.s32 4, %v3492_v57  ;;  %v1075_v33 = vadd.s32 %v3455_v55, %v3460_v31 }
 0x167   : > { %v1091_v17 = vsub.s32 32, %v1090_v56  ;;  %v1095_v32 = vsub.s32 4294967266, %v1090_v56  ;;  %v2339_v43 = vadd.s32 4294967169, %v1231_v11  ;;  %vm3549_vm4 = vcmp.le.f32.partialorder %v1019_v63, 0.7853982 }
 0x168   : > { %v1178_v13 = vmul.u32 %v1171_v30, %v1162_v50  ;;  %vm1180_vm5 = vc.u32 %v3533_v8, %v3535_v36  ;;  %v1181_v21 = vadd.s32 1, %v3536_v42  ;;  %v1092_v37 = vshll.u32 %v3510_v2, %v1090_v56 }
 0x169   : > { %v1093_v20 = vshrl.u32 %v1075_v33, %v1091_v17  ;;  %v1096_v4 = vadd.s32 127, %v1095_v32  ;;  %v1237_v55 = vadd.s32 1, %v2339_v43  ;;  %vm1010_vm6 = vcmp.lt.s32.totalorder %v1009_v45, 2 }
 0x16a   : > { %v1106_v31 = vsel %vm1021_vm3, %v1105_v48, %v3492_v57  ;;  %v1182_v63 = vsel %vm1180_vm5, %v1181_v21, %v3536_v42  ;;  %v1227_v39 = vand.u32 2147483647, %v3515_v47  ;;  %vm1011_vm8 = vcmp.eq.s32.totalorder %v1009_v45, 0 }
 0x16b   : > { %v2545_v51 = vpop.eup %2544  ;;  %v1094_v5 = vor.u32 %v1093_v20, %v1092_v37  ;;  %v1097_v30 = vshll.u32 %v1096_v4, 23  ;;  %v1183_v53 = vadd.s32 %v1182_v63, %v1178_v13  ;;  %vm1238_vm7 = vcmp.gt.s32.totalorder %v1237_v55, 0 }
 0x16c   : > { %v2547_v28 = vpop.eup %2546  ;;  %v1015_v2 = vxor.u32 2147483648, %v2545_v51  ;;  %v1239_v59 = vsel %vm1238_vm7, %v1237_v55, 0  ;;  %v1334_v16 = vand.u32 2139095040, %v3530_v12  ;;  %vm1014_vm9 = vcmp.eq.s32.totalorder %v1009_v45, 2 }
 0x16d   : > { %v1012_v38 = vxor.u32 2147483648, %v2547_v28  ;;  %v1098_v34 = vor.u32 4788187, %v1097_v30  ;;  %v1184_v24 = vadd.s32 536870912, %v1183_v53  ;;  %v1108_v27 = vsel %vm3549_vm4, 0, %v1106_v31 }
 0x16e   : > { %v1016_v57 = vsel %vm1014_vm9, %v1015_v2, %v2547_v28  ;;  %v1234_v3 = vand.u32 8388607, %v1227_v39  ;;  %v1241_v40 = vand.u32 31, %v1239_v59  ;;  %v1101_v49 = vcvt.s32.f32 %v1094_v5 }
 0x16f   : > { %v1013_v44 = vsel %vm1011_vm8, %v2545_v51, %v1012_v38  ;;  %v1099_v46 = vand.u32 2147483647, %v1098_v34  ;;  %v3567_v26 = vshrl.u32 %v1184_v24, 30  ;;  %vm1007_vm10 = vweird.f32 %v3215_v29 }
 0x170   : > { %v1017_v23 = vsel %vm1010_vm6, %v1013_v44, %v1016_v57  ;;  %v1242_v22 = vsub.s32 32, %v1241_v40  ;;  %v1335_v42 = vshrl.u32 %v1334_v16, 23  ;;  %v1112_v56 = vadd.s32 3, %v1108_v27 }
 0x171   : > { %v1018_v50 = vsel %vm1007_vm10, nan, %v1017_v23  ;;  %v1102_v11 = vmul.f32 %v1101_v49, %v1099_v46  ;;  %v1186_v48 = vshll.u32 %v3567_v26, 30  ;;  %v1235_v33 = vor.u32 8388608, %v1234_v3 }
 0x172   : > { %v1244_v17 = vshll.u32 %v2671_v54, %v1241_v40  ;;  %v1245_v32 = vshrl.u32 %v2672_v58, %v1242_v22  ;;  %v1248_v43 = vshrl.u32 %v2673_v60, %v1242_v22  ;;  %1539 = vst [vmem:[%s3135_s28 + $0x30] sm:$0xff] %v1018_v50  ;;  %v1247_v29 = vshll.u32 %v2672_v58, %v1241_v40 }
 0x173   : > { %v1103_v13 = vxor.u32 2147483648, %v1102_v11  ;;  %v3576_v21 = vsub.s32 %v1183_v53, %v1186_v48  ;;  %v1251_v45 = vshrl.u32 %v2674_v62, %v1242_v22  ;;  %v1240_v37 = vshrl.u32 %v1239_v59, 5 }
 0x174   : > { %v1246_v20 = vor.u32 %v1245_v32, %v1244_v17  ;;  %v1250_v4 = vshll.u32 %v2673_v60, %v1241_v40  ;;  %v2343_v55 = vadd.s32 4294967169, %v1335_v42  ;;  %v1249_v51 = vor.u32 %v1248_v43, %v1247_v29 }
 0x175   : > { %v1104_v31 = vsel %vm1021_vm3, %v1103_v13, %v1102_v11  ;;  %v1189_v63 = vsub.s32 0, %v3576_v21  ;;  %v1253_v5 = vshll.u32 %v2674_v62, %v1241_v40  ;;  %v1254_v53 = vshrl.u32 %v2675_v0, %v1242_v22 }
 0x176   : > { %v1107_v30 = vsel %vm3549_vm4, %v3231_v35, %v1104_v31  ;;  %v1256_v28 = vshll.u32 %v2675_v0, %v1241_v40  ;;  %v1257_v2 = vshrl.u32 %v2676_v7, %v1242_v22  ;;  %v3591_v59 = vand.u32 3, %v1112_v56 }
 0x177   : > { %2548 = vcosq.f32 %v1107_v30  ;;  %v2336_v16 = vmin.u32 %v1189_v63, %v3576_v21  ;;  %v1252_v38 = vor.u32 %v1251_v45, %v1250_v4  ;;  %v1255_v34 = vor.u32 %v1254_v53, %v1253_v5 }
 0x178   : > { %2550 = vsinq.f32 %v1107_v30  ;;  %v1258_v24 = vor.u32 %v1257_v2, %v1256_v28  ;;  %v1275_v57 = vshll.u32 %v1235_v33, 8  ;;  %v1243_v41 = vshrl.u32 %v2671_v54, %v1242_v22 }
 0x179   : > { %v1191_v27 = vclz %v2336_v16  ;;  %vm1259_vm11 = vcmp.lt.s32.totalorder %v1240_v37, 1  ;;  %v1341_v3 = vadd.s32 1, %v2343_v55  ;;  %vm1260_vm12 = vcmp.lt.s32.totalorder %v1240_v37, 2 }
 0x17a   : > { %vm1261_vm13 = vcmp.lt.s32.totalorder %v1240_v37, 3  ;;  %vm1262_vm14 = vcmp.lt.s32.totalorder %v1240_v37, 4  ;;  %v1267_v40 = vsel %vm1259_vm11, %v1246_v20, %v1249_v51  ;;  %v1271_v23 = vsel %vm1259_vm11, %v1249_v51, %v1252_v38 }
 0x17b   : > { %v2337_v44 = vadd.s32 4294967294, %v1191_v27  ;;  %v1264_v46 = vsel %vm1262_vm14, %v1252_v38, 2102212464  ;;  %v1268_v49 = vsel %vm1262_vm14, %v1255_v34, 920167782  ;;  %v1263_v42 = vsel %vm1259_vm11, %v1243_v41, %v1246_v20 }
 0x17c   : > { %v1265_v50 = vsel %vm1261_vm13, %v1249_v51, %v1264_v46  ;;  %v1269_v11 = vsel %vm1261_vm13, %v1252_v38, %v1268_v49  ;;  %v1272_v56 = vsel %vm1262_vm14, %v1258_v24, 1326507024  ;;  %vm1342_vm0 = vcmp.gt.s32.totalorder %v1341_v3, 0 }
 0x17d   : > { %vm2338_vm15 = vcmp.lt.s32.totalorder %v2337_v44, 0  ;;  %v1270_v48 = vsel %vm1260_vm12, %v1267_v40, %v1269_v11  ;;  %v1273_v33 = vsel %vm1261_vm13, %v1255_v34, %v1272_v56  ;;  %v1179_v13 = vadd.s32 %v3535_v36, %v3533_v8 }
 0x17e   : > { %v1194_v22 = vsel %vm2338_vm15, 0, %v2337_v44  ;;  %v1274_v17 = vsel %vm1260_vm12, %v1271_v23, %v1273_v33  ;;  %v3597_v32 = vmul.u32.u64.low %v1275_v57, %v1270_v48  ;;  %v3598_v43 = vmul.u32.u64.high %v1275_v57, %v1270_v48, %v3597_v32 }
 0x17f   : > { %v1195_v29 = vsub.s32 32, %v1194_v22  ;;  %v1199_v45 = vsub.s32 4294967266, %v1194_v22  ;;  %v1331_v20 = vand.u32 2147483647, %v3530_v12  ;;  %v1266_v4 = vsel %vm1260_vm12, %v1263_v42, %v1265_v50 }
 0x180   : > { %v3605_v55 = vmul.u32.u64.low %v1275_v57, %v1274_v17  ;;  %v3606_v31 = vmul.u32.u64.high %v1275_v57, %v1274_v17, %v3605_v55  ;;  %v1343_v63 = vsel %vm1342_vm0, %v1341_v3, 0  ;;  %v1196_v51 = vshll.u32 %v3576_v21, %v1194_v22 }
 0x181   : > { %v1197_v5 = vshrl.u32 %v1179_v13, %v1195_v29  ;;  %v1200_v30 = vadd.s32 127, %v1199_v45  ;;  %v1345_v53 = vand.u32 31, %v1343_v63  ;;  %vm1111_vm1 = vweird.f32 %v3231_v35 }
 0x182   : > { %vm1125_vm2 = vcmp.lt.s32.totalorder %v3381_v6, 0  ;;  %v1209_v8 = vsub.s32 4, %v3567_v26  ;;  %v1285_v36 = vadd.s32 1, %v3598_v43  ;;  %vm1114_vm3 = vcmp.lt.s32.totalorder %v3591_v59, 2 }
 0x183   : > { %vm1115_vm4 = vcmp.eq.s32.totalorder %v3591_v59, 0  ;;  %v1198_v37 = vor.u32 %v1197_v5, %v1196_v51  ;;  %v1201_v28 = vshll.u32 %v1200_v30, 23  ;;  %vm1118_vm5 = vcmp.eq.s32.totalorder %v3591_v59, 2 }
 0x184   : > { %v2549_v2 = vpop.eup %2548  ;;  %v1282_v21 = vmul.u32 %v1275_v57, %v1266_v4  ;;  %vm1284_vm6 = vc.u32 %v3606_v31, %v3597_v32  ;;  %v1346_v16 = vsub.s32 32, %v1345_v53  ;;  %vm3620_vm7 = vcmp.le.f32.partialorder %v1123_v61, 0.7853982 }
 0x185   : > { %v2551_v38 = vpop.eup %2550  ;;  %v1119_v34 = vxor.u32 2147483648, %v2549_v2  ;;  %v1202_v27 = vor.u32 4788187, %v1201_v28  ;;  %v1286_v41 = vsel %vm1284_vm6, %v1285_v36, %v3598_v43  ;;  %v1338_v3 = vand.u32 8388607, %v1331_v20 }
 0x186   : > { %v1116_v40 = vxor.u32 2147483648, %v2551_v38  ;;  %v1210_v57 = vsel %vm1125_vm2, %v1209_v8, %v3567_v26  ;;  %v1287_v44 = vadd.s32 %v1286_v41, %v1282_v21  ;;  %v3630_v46 = vshrl.u32 %v1343_v63, 5 }
 0x187   : > { %v1120_v49 = vsel %vm1118_vm5, %v1119_v34, %v2551_v38  ;;  %v1203_v23 = vand.u32 2147483647, %v1202_v27  ;;  %v1205_v61 = vcvt.s32.f32 %v1198_v37  ;;  %v1348_v42 = vshll.u32 %v2671_v54, %v1345_v53 }
 0x188   : > { %v1117_v50 = vsel %vm1115_vm4, %v2549_v2, %v1116_v40  ;;  %v1288_v11 = vadd.s32 536870912, %v1287_v44  ;;  %v1349_v56 = vshrl.u32 %v2672_v58, %v1346_v16  ;;  %v1352_v48 = vshrl.u32 %v2673_v60, %v1346_v16 }
 0x189   : > { %v1121_v26 = vsel %vm1114_vm3, %v1117_v50, %v1120_v49  ;;  %v1206_v33 = vmul.f32 %v1205_v61, %v1203_v23  ;;  %v1351_v22 = vshll.u32 %v2672_v58, %v1345_v53  ;;  %v1355_v17 = vshrl.u32 %v2674_v62, %v1346_v16 }
 0x18a   : > { %v1122_v43 = vsel %vm1111_vm1, nan, %v1121_v26  ;;  %v3643_v13 = vshrl.u32 %v1288_v11, 30  ;;  %v1354_v29 = vshll.u32 %v2673_v60, %v1345_v53  ;;  %v1358_v45 = vshrl.u32 %v2675_v0, %v1346_v16 }
 0x18b   : > { %v1207_v4 = vxor.u32 2147483648, %v1206_v33  ;;  %v1357_v55 = vshll.u32 %v2674_v62, %v1345_v53  ;;  %v1360_v59 = vshll.u32 %v2675_v0, %v1345_v53  ;;  %v1361_v63 = vshrl.u32 %v2676_v7, %v1346_v16  ;;  %1540 = vst [vmem:[%s3135_s28 + $0x38] sm:$0xff] %v1122_v43 }
 0x18c   : > { %v1290_v51 = vshll.u32 %v3643_v13, 30  ;;  %v1339_v5 = vor.u32 8388608, %v1338_v3  ;;  %v1350_v30 = vor.u32 %v1349_v56, %v1348_v42  ;;  %v1353_v35 = vor.u32 %v1352_v48, %v1351_v22 }
 0x18d   : > { %v1208_v8 = vsel %vm1125_vm2, %v1207_v4, %v1206_v33  ;;  %v1356_v36 = vor.u32 %v1355_v17, %v1354_v29  ;;  %v1359_v37 = vor.u32 %v1358_v45, %v1357_v55  ;;  %v1362_v28 = vor.u32 %v1361_v63, %v1360_v59 }
 0x18e   : > { %v1211_v2 = vsel %vm3620_vm7, %v3381_v6, %v1208_v8  ;;  %v1212_v53 = vsel %vm3620_vm7, 0, %v1210_v57  ;;  %v1291_v21 = vsub.s32 %v1287_v44, %v1290_v51  ;;  %v1438_v38 = vand.u32 2139095040, %v3541_v52 }
 0x18f   : > { %2552 = vcosq.f32 %v1211_v2  ;;  %v1347_v34 = vshrl.u32 %v2671_v54, %v1346_v16  ;;  %vm1363_vm8 = vcmp.lt.s32.totalorder %v3630_v46, 1  ;;  %vm1365_vm9 = vcmp.lt.s32.totalorder %v3630_v46, 3 }
 0x190   : > { %2554 = vsinq.f32 %v1211_v2  ;;  %v1293_v27 = vsub.s32 0, %v1291_v21  ;;  %vm1366_vm10 = vcmp.lt.s32.totalorder %v3630_v46, 4  ;;  %v1371_v41 = vsel %vm1363_vm8, %v1350_v30, %v1353_v35 }
 0x191   : > { %v1368_v3 = vsel %vm1366_vm10, %v1356_v36, 2102212464  ;;  %v1372_v24 = vsel %vm1366_vm10, %v1359_v37, 920167782  ;;  %v1375_v40 = vsel %vm1363_vm8, %v1353_v35, %v1356_v36  ;;  %v1376_v57 = vsel %vm1366_vm10, %v1362_v28, 1326507024 }
 0x192   : > { %v2340_v44 = vmin.u32 %v1293_v27, %v1291_v21  ;;  %vm1364_vm11 = vcmp.lt.s32.totalorder %v3630_v46, 2  ;;  %v1373_v16 = vsel %vm1365_vm9, %v1356_v36, %v1372_v24  ;;  %v1377_v49 = vsel %vm1365_vm9, %v1359_v37, %v1376_v57 }
 0x193   : > { %v1374_v23 = vsel %vm1364_vm11, %v1371_v41, %v1373_v16  ;;  %v1378_v61 = vsel %vm1364_vm11, %v1375_v40, %v1377_v49  ;;  %v1379_v42 = vshll.u32 %v1339_v5, 8  ;;  %v1439_v50 = vshrl.u32 %v1438_v38, 23 }
 0x194   : > { %v1216_v11 = vadd.s32 3, %v1212_v53  ;;  %v1295_v56 = vclz %v2340_v44  ;;  %v1367_v48 = vsel %vm1363_vm8, %v1347_v34, %v1350_v30  ;;  %v1369_v26 = vsel %vm1365_vm9, %v1353_v35, %v1368_v3 }
 0x195   : > { %v3677_v33 = vmul.u32.u64.low %v1379_v42, %v1378_v61  ;;  %v3678_v22 = vmul.u32.u64.high %v1379_v42, %v1378_v61, %v3677_v33  ;;  %v3680_v17 = vmul.u32.u64.low %v1379_v42, %v1374_v23  ;;  %v3681_v43 = vmul.u32.u64.high %v1379_v42, %v1374_v23, %v3680_v17 }
 0x196   : > { %v2341_v29 = vadd.s32 4294967294, %v1295_v56  ;;  %v2347_v45 = vadd.s32 4294967169, %v1439_v50  ;;  %v1370_v4 = vsel %vm1364_vm11, %v1367_v48, %v1369_v26  ;;  %v1217_v55 = vand.u32 3, %v1216_v11 }
 0x197   : > { %vm1215_vm13 = vweird.f32 %v3381_v6  ;;  %v1283_v63 = vadd.s32 %v3597_v32, %v3606_v31  ;;  %vm1388_vm14 = vc.u32 %v3678_v22, %v3680_v17  ;;  %v1389_v51 = vadd.s32 1, %v3681_v43 }
 0x198   : > { %vm2342_vm12 = vcmp.lt.s32.totalorder %v2341_v29, 0  ;;  %v1445_v59 = vadd.s32 1, %v2347_v45  ;;  %v1386_v35 = vmul.u32 %v1379_v42, %v1370_v4  ;;  %vm1229_vm0 = vcmp.lt.s32.totalorder %v3515_v47, 0 }
 0x199   : > { %v1298_v46 = vsel %vm2342_vm12, 0, %v2341_v29  ;;  %v1390_v8 = vsel %vm1388_vm14, %v1389_v51, %v3681_v43  ;;  %v1435_v36 = vand.u32 2147483647, %v3541_v52  ;;  %vm1222_vm1 = vcmp.eq.s32.totalorder %v1217_v55, 2 }
 0x19a   : > { %v1299_v5 = vsub.s32 32, %v1298_v46  ;;  %v1303_v30 = vsub.s32 4294967266, %v1298_v46  ;;  %vm1446_vm15 = vcmp.gt.s32.totalorder %v1445_v59, 0  ;;  %v1300_v32 = vshll.u32 %v1291_v21, %v1298_v46  ;;  %v3701_v21 = vld [vmem:[%s2778_s23 + $0x2] ss:$4 sm:$0x3] }
 0x19b   : > { %v1447_v37 = vsel %vm1446_vm15, %v1445_v59, 0  ;;  %v1391_v53 = vadd.s32 %v1390_v8, %v1386_v35  ;;  %v1313_v27 = vsub.s32 4, %v3643_v13  ;;  %vm3696_vm2 = vcmp.le.f32.partialorder %v1227_v39, 0.7853982 }
 0x19c   : > { %v2553_v28 = vpop.eup %2552  ;;  %v1301_v31 = vshrl.u32 %v1283_v63, %v1299_v5  ;;  %v1304_v2 = vadd.s32 127, %v1303_v30  ;;  %v1449_v41 = vand.u32 31, %v1447_v37  ;;  %vm1219_vm3 = vcmp.eq.s32.totalorder %v1217_v55, 0 }
 0x19d   : > { %v2555_v38 = vpop.eup %2554  ;;  %v1223_v34 = vxor.u32 2147483648, %v2553_v28  ;;  %v1392_v44 = vadd.s32 536870912, %v1391_v53  ;;  %v1442_v49 = vand.u32 8388607, %v1435_v36  ;;  %vm1218_vm4 = vcmp.lt.s32.totalorder %v1217_v55, 2 }
 0x19e   : > { %v1220_v3 = vxor.u32 2147483648, %v2555_v38  ;;  %v1302_v40 = vor.u32 %v1301_v31, %v1300_v32  ;;  %v1305_v57 = vshll.u32 %v1304_v2, 23  ;;  %v1450_v23 = vsub.s32 32, %v1449_v41 }
 0x19f   : > { %v1224_v16 = vsel %vm1222_vm1, %v1223_v34, %v2555_v38  ;;  %v3705_v50 = vshrl.u32 %v1392_v44, 30  ;;  %v3710_v56 = vsel %vm1229_vm0, %v1313_v27, %v3643_v13  ;;  %v1443_v45 = vor.u32 8388608, %v1442_v49 }
 0x1a0   : > { %v1221_v61 = vsel %vm1219_vm3, %v2553_v28, %v1220_v3  ;;  %v1306_v42 = vor.u32 4788187, %v1305_v57  ;;  %v1309_v11 = vcvt.s32.f32 %v1302_v40  ;;  %v1453_v48 = vshrl.u32 %v2672_v58, %v1450_v23 }
 0x1a1   : > { %v1225_v39 = vsel %vm1218_vm4, %v1221_v61, %v1224_v16  ;;  %v1394_v43 = vshll.u32 %v3705_v50, 30  ;;  %v1456_v29 = vshrl.u32 %v2673_v60, %v1450_v23  ;;  %v1452_v4 = vshll.u32 %v2671_v54, %v1449_v41 }
 0x1a2   : > { %v1226_v26 = vsel %vm1215_vm13, nan, %v1225_v39  ;;  %v1307_v33 = vand.u32 2147483647, %v1306_v42  ;;  %v1459_v55 = vshrl.u32 %v2674_v62, %v1450_v23  ;;  %v3722_v13 = vrot.slane %v3701_v21, %v2780_v9 }
 0x1a3   : > { %1541 = vst [vmem:[%s3135_s28 + $0x40] sm:$0xff] %v1226_v26  ;;  %v3724_v63 = vsub.s32 %v1391_v53, %v1394_v43  ;;  %v1448_v6 = vshrl.u32 %v1447_v37, 5  ;;  %v1455_v46 = vshll.u32 %v2672_v58, %v1449_v41  ;;  %v1454_v51 = vor.u32 %v1453_v48, %v1452_v4 }
 0x1a4   : > { %v1310_v59 = vmul.f32 %v1309_v11, %v1307_v33  ;;  %v1458_v5 = vshll.u32 %v2673_v60, %v1449_v41  ;;  %v1461_v30 = vshll.u32 %v2674_v62, %v1449_v41  ;;  %v1462_v35 = vshrl.u32 %v2675_v0, %v1450_v23 }
 0x1a5   : > { %v1397_v28 = vsub.s32 0, %v3724_v63  ;;  %v1457_v32 = vor.u32 %v1456_v29, %v1455_v46  ;;  %v1465_v9 = vshrl.u32 %v2676_v7, %v1450_v23  ;;  %v1316_v31 = vsel %vm3696_vm2, 0, %v3710_v56 }
 0x1a6   : > { %v1311_v8 = vxor.u32 2147483648, %v1310_v59  ;;  %v1460_v37 = vor.u32 %v1459_v55, %v1458_v5  ;;  %v1463_v2 = vor.u32 %v1462_v35, %v1461_v30  ;;  %v1464_v53 = vshll.u32 %v2675_v0, %v1449_v41 }
 0x1a7   : > { %v2344_v34 = vmin.u32 %v1397_v28, %v3724_v63  ;;  %v1483_v27 = vshll.u32 %v1443_v45, 8  ;;  %v1558_v3 = vmul.f32 %v3722_v13, %v2793_v15  ;;  %v1451_v57 = vshrl.u32 %v2671_v54, %v1450_v23 }
 0x1a8   : > { %v1312_v38 = vsel %vm1229_vm0, %v1311_v8, %v1310_v59  ;;  %v1466_v44 = vor.u32 %v1465_v9, %v1464_v53  ;;  %vm1467_vm5 = vcmp.lt.s32.totalorder %v1448_v6, 1  ;;  %vm1470_vm6 = vcmp.lt.s32.totalorder %v1448_v6, 4 }
 0x1a9   : > { %v1315_v40 = vsel %vm3696_vm2, %v3515_v47, %v1312_v38  ;;  %v1399_v16 = vclz %v2344_v34  ;;  %v1475_v41 = vsel %vm1467_vm5, %v1454_v51, %v1457_v32  ;;  %vm1469_vm7 = vcmp.lt.s32.totalorder %v1448_v6, 3 }
 0x1aa   : > { %2556 = vcosq.f32 %v1315_v40  ;;  %v1472_v49 = vsel %vm1470_vm6, %v1460_v37, 2102212464  ;;  %v1476_v61 = vsel %vm1470_vm6, %v1463_v2, 920167782  ;;  %vm1468_vm8 = vcmp.lt.s32.totalorder %v1448_v6, 2 }
 0x1ab   : > { %2558 = vsinq.f32 %v1315_v40  ;;  %v2345_v42 = vadd.s32 4294967294, %v1399_v16  ;;  %v1477_v39 = vsel %vm1469_vm7, %v1460_v37, %v1476_v61  ;;  %v1479_v11 = vsel %vm1467_vm5, %v1457_v32, %v1460_v37 }
 0x1ac   : > { %v1471_v56 = vsel %vm1467_vm5, %v1451_v57, %v1454_v51  ;;  %v1473_v48 = vsel %vm1469_vm7, %v1457_v32, %v1472_v49  ;;  %v1478_v24 = vsel %vm1468_vm8, %v1475_v41, %v1477_v39  ;;  %v1480_v26 = vsel %vm1470_vm6, %v1466_v44, 1326507024 }
 0x1ad   : > { %vm2346_vm9 = vcmp.lt.s32.totalorder %v2345_v42, 0  ;;  %v1481_v23 = vsel %vm1469_vm7, %v1463_v2, %v1480_v26  ;;  %v3746_v33 = vmul.u32.u64.low %v1483_v27, %v1478_v24  ;;  %v3747_v43 = vmul.u32.u64.high %v1483_v27, %v1478_v24, %v3746_v33 }
 0x1ae   : > { %v1387_v29 = vadd.s32 %v3680_v17, %v3678_v22  ;;  %v1402_v45 = vsel %vm2346_vm9, 0, %v2345_v42  ;;  %v1482_v4 = vsel %vm1468_vm8, %v1479_v11, %v1481_v23  ;;  %v3755_v55 = vrot.slane %v3701_v21, %v2782_v10 }
 0x1af   : > { %v1403_v59 = vsub.s32 32, %v1402_v45  ;;  %v1407_v46 = vsub.s32 4294967266, %v1402_v45  ;;  %v1417_v51 = vsub.s32 4, %v3705_v50  ;;  %v3759_v5 = vadd.f32 %v1558_v3, %v2799_v18 }
 0x1b0   : > { %v1320_v30 = vadd.s32 3, %v1316_v31  ;;  %v1474_v35 = vsel %vm1468_vm8, %v1471_v56, %v1473_v48  ;;  %v3762_v8 = vmul.u32.u64.low %v1483_v27, %v1482_v4  ;;  %v3763_v28 = vmul.u32.u64.high %v1483_v27, %v1482_v4, %v3762_v8 }
 0x1b1   : > { %v1404_v22 = vshll.u32 %v3724_v63, %v1402_v45  ;;  %v1405_v17 = vshrl.u32 %v1387_v29, %v1403_v59  ;;  %v1408_v32 = vadd.s32 127, %v1407_v46  ;;  %v1493_v10 = vadd.s32 1, %v3747_v43 }
 0x1b2   : > { %vm1333_vm10 = vcmp.lt.s32.totalorder %v3530_v12, 0  ;;  %v1559_v21 = vmul.f32 %v3755_v55, %v2793_v15  ;;  %v1570_v9 = vand.u32 2147483647, %v3759_v5  ;;  %v1573_v2 = vand.u32 2139095040, %v3759_v5 }
 0x1b3   : > { %v1406_v37 = vor.u32 %v1405_v17, %v1404_v22  ;;  %v1409_v31 = vshll.u32 %v1408_v32, 23  ;;  %v1418_v6 = vsel %vm1333_vm10, %v1417_v51, %v3705_v50  ;;  %v1321_v63 = vand.u32 3, %v1320_v30 }
 0x1b4   : > { %v1490_v53 = vmul.u32 %v1483_v27, %v1474_v35  ;;  %vm1492_vm11 = vc.u32 %v3763_v28, %v3746_v33  ;;  %v3778_v38 = vadd.f32 %v1559_v21, %v2799_v18  ;;  %vm3782_vm12 = vcmp.le.f32.partialorder %v1331_v20, 0.7853982 }
 0x1b5   : > { %v1410_v34 = vor.u32 4788187, %v1409_v31  ;;  %v1494_v3 = vsel %vm1492_vm11, %v1493_v10, %v3747_v43  ;;  %v1574_v50 = vshrl.u32 %v1573_v2, 23  ;;  %vm1319_vm13 = vweird.f32 %v3515_v47 }
 0x1b6   : > { %v1420_v27 = vsel %vm3782_vm12, 0, %v1418_v6  ;;  %v1495_v57 = vadd.s32 %v1494_v3, %v1490_v53  ;;  %v1577_v18 = vand.u32 8388607, %v1570_v9  ;;  %v1413_v41 = vcvt.s32.f32 %v1406_v37 }
 0x1b7   : > { %v2557_v40 = vpop.eup %2556  ;;  %v1411_v20 = vand.u32 2147483647, %v1410_v34  ;;  %v2352_v49 = vadd.s32 4294967169, %v1574_v50  ;;  %vm1326_vm14 = vcmp.eq.s32.totalorder %v1321_v63, 2  ;;  %v1677_v39 = vand.u32 2139095040, %v3778_v38 }
 0x1b8   : > { %v2559_v44 = vpop.eup %2558  ;;  %v1327_v16 = vxor.u32 2147483648, %v2557_v40  ;;  %v1496_v42 = vadd.s32 536870912, %v1495_v57  ;;  %vm1323_vm15 = vcmp.eq.s32.totalorder %v1321_v63, 0  ;;  %vm1322_vm0 = vcmp.lt.s32.totalorder %v1321_v63, 2 }
 0x1b9   : > { %v1324_v61 = vxor.u32 2147483648, %v2559_v44  ;;  %v1414_v56 = vmul.f32 %v1413_v41, %v1411_v20  ;;  %v1580_v48 = vadd.s32 1, %v2352_v49  ;;  %v1424_v26 = vadd.s32 3, %v1420_v27 }
 0x1ba   : > { %v1328_v11 = vsel %vm1326_vm14, %v1327_v16, %v2559_v44  ;;  %v3793_v23 = vshrl.u32 %v1496_v42, 30  ;;  %v1578_v45 = vor.u32 8388608, %v1577_v18  ;;  %v1678_v51 = vshrl.u32 %v1677_v39, 23 }
 0x1bb   : > { %v1325_v24 = vsel %vm1323_vm15, %v2557_v40, %v1324_v61  ;;  %v1415_v29 = vxor.u32 2147483648, %v1414_v56  ;;  %vm1581_vm1 = vcmp.gt.s32.totalorder %v1580_v48, 0  ;;  %v3804_v22 = vand.u32 3, %v1424_v26 }
 0x1bc   : > { %v1329_v43 = vsel %vm1322_vm0, %v1325_v24, %v1328_v11  ;;  %v1498_v59 = vshll.u32 %v3793_v23, 30  ;;  %v1582_v46 = vsel %vm1581_vm1, %v1580_v48, 0  ;;  %v3810_v47 = vmul.f32 %v3722_v13, %v2801_v19 }
 0x1bd   : > { %v1330_v4 = vsel %vm1319_vm13, nan, %v1329_v43  ;;  %v1416_v30 = vsel %vm1333_vm10, %v1415_v29, %v1414_v56  ;;  %v1584_v35 = vand.u32 31, %v1582_v46  ;;  %v1491_v32 = vadd.s32 %v3746_v33, %v3763_v28 }
 0x1be   : > { %1542 = vst [vmem:[%s3135_s28 + $0x48] sm:$0xff] %v1330_v4  ;;  %v1419_v8 = vsel %vm3782_vm12, %v3530_v12, %v1416_v30  ;;  %v3806_v17 = vsub.s32 %v1495_v57, %v1498_v59  ;;  %v1674_v21 = vand.u32 2147483647, %v3778_v38  ;;  %v3816_v31 = vshll.u32 %v1578_v45, 8 }
 0x1bf   : > { %2560 = vcosq.f32 %v1419_v8  ;;  %v1585_v10 = vsub.s32 32, %v1584_v35  ;;  %v2356_v6 = vadd.s32 4294967169, %v1678_v51  ;;  %v1587_v2 = vshll.u32 %v2671_v54, %v1584_v35 }
 0x1c0   : > { %2562 = vsinq.f32 %v1419_v8  ;;  %v1501_v37 = vsub.s32 0, %v3806_v17  ;;  %v1590_v53 = vshll.u32 %v2672_v58, %v1584_v35  ;;  %v1583_v33 = vshrl.u32 %v1582_v46, 5 }
 0x1c1   : > { %v1588_v63 = vshrl.u32 %v2672_v58, %v1585_v10  ;;  %v1591_v15 = vshrl.u32 %v2673_v60, %v1585_v10  ;;  %v1593_v28 = vshll.u32 %v2673_v60, %v1584_v35  ;;  %v1594_v3 = vshrl.u32 %v2674_v62, %v1585_v10 }
 0x1c2   : > { %v2348_v34 = vmin.u32 %v1501_v37, %v3806_v17  ;;  %v1596_v27 = vshll.u32 %v2674_v62, %v1584_v35  ;;  %v1597_v57 = vshrl.u32 %v2675_v0, %v1585_v10  ;;  %v1521_v44 = vsub.s32 4, %v3793_v23 }
 0x1c3   : > { %v1589_v50 = vor.u32 %v1588_v63, %v1587_v2  ;;  %v1592_v40 = vor.u32 %v1591_v15, %v1590_v53  ;;  %v1586_v16 = vshrl.u32 %v2671_v54, %v1585_v10  ;;  %v1684_v20 = vadd.s32 1, %v2356_v6 }
 0x1c4   : > { %v1503_v18 = vclz %v2348_v34  ;;  %v1595_v41 = vor.u32 %v1594_v3, %v1593_v28  ;;  %v1598_v49 = vor.u32 %v1597_v57, %v1596_v27  ;;  %v1599_v61 = vshll.u32 %v2675_v0, %v1584_v35 }
 0x1c5   : > { %v1600_v42 = vshrl.u32 %v2676_v7, %v1585_v10  ;;  %vm1430_vm2 = vcmp.eq.s32.totalorder %v3804_v22, 2  ;;  %vm1602_vm3 = vcmp.lt.s32.totalorder %v1583_v33, 1  ;;  %vm1604_vm4 = vcmp.lt.s32.totalorder %v1583_v33, 3 }
 0x1c6   : > { %v2349_v39 = vadd.s32 4294967294, %v1503_v18  ;;  %vm1605_vm5 = vcmp.lt.s32.totalorder %v1583_v33, 4  ;;  %vm1427_vm6 = vcmp.eq.s32.totalorder %v3804_v22, 0  ;;  %vm1437_vm7 = vcmp.lt.s32.totalorder %v3541_v52, 0 }
 0x1c7   : > { %v1601_v11 = vor.u32 %v1600_v42, %v1599_v61  ;;  %v1606_v56 = vsel %vm1602_vm3, %v1586_v16, %v1589_v50  ;;  %v1607_v48 = vsel %vm1605_vm5, %v1595_v41, 2102212464  ;;  %v1610_v24 = vsel %vm1602_vm3, %v1589_v50, %v1592_v40 }
 0x1c8   : > { %vm1426_vm8 = vcmp.lt.s32.totalorder %v3804_v22, 2  ;;  %vm2350_vm9 = vcmp.lt.s32.totalorder %v2349_v39, 0  ;;  %vm1603_vm10 = vcmp.lt.s32.totalorder %v1583_v33, 2  ;;  %v1608_v26 = vsel %vm1604_vm4, %v1592_v40, %v1607_v48 }
 0x1c9   : > { %v1611_v43 = vsel %vm1605_vm5, %v1598_v49, 920167782  ;;  %vm1423_vm11 = vweird.f32 %v3530_v12  ;;  %v1506_v29 = vsel %vm2350_vm9, 0, %v2349_v39  ;;  %v1614_v4 = vsel %vm1602_vm3, %v1592_v40, %v1595_v41 }
 0x1ca   : > { %v1612_v45 = vsel %vm1604_vm4, %v1595_v41, %v1611_v43  ;;  %v1615_v59 = vsel %vm1605_vm5, %v1601_v11, 1326507024  ;;  %v1507_v46 = vsub.s32 32, %v1506_v29  ;;  %v1511_v51 = vsub.s32 4294967266, %v1506_v29 }
 0x1cb   : > { %v1609_v30 = vsel %vm1603_vm10, %v1606_v56, %v1608_v26  ;;  %v1613_v35 = vsel %vm1603_vm10, %v1610_v24, %v1612_v45  ;;  %v1508_v8 = vshll.u32 %v3806_v17, %v1506_v29  ;;  %v1616_v10 = vsel %vm1604_vm4, %v1598_v49, %v1615_v59 }
 0x1cc   : > { %v3849_v37 = vmul.u32.u64.low %v3816_v31, %v1613_v35  ;;  %v3850_v6 = vmul.u32.u64.high %v3816_v31, %v1613_v35, %v3849_v37  ;;  %v2561_v2 = vpop.eup %2560  ;;  %vm3855_vm12 = vcmp.le.f32.partialorder %v1435_v36, 0.7853982  ;;  %v1509_v53 = vshrl.u32 %v1491_v32, %v1507_v46 }
 0x1cd   : > { %v1512_v15 = vadd.s32 127, %v1511_v51  ;;  %v1617_v34 = vsel %vm1603_vm10, %v1614_v4, %v1616_v10  ;;  %vm1685_vm13 = vcmp.gt.s32.totalorder %v1684_v20, 0  ;;  %v2563_v17 = vpop.eup %2562  ;;  %v1431_v28 = vxor.u32 2147483648, %v2561_v2 }
 0x1ce   : > { %v3861_v3 = vmul.u32.u64.low %v3816_v31, %v1617_v34  ;;  %v3862_v50 = vmul.u32.u64.high %v3816_v31, %v1617_v34, %v3861_v3  ;;  %v1686_v40 = vsel %vm1685_vm13, %v1684_v20, 0  ;;  %v1428_v27 = vxor.u32 2147483648, %v2563_v17 }
 0x1cf   : > { %v1510_v57 = vor.u32 %v1509_v53, %v1508_v8  ;;  %v1513_v18 = vshll.u32 %v1512_v15, 23  ;;  %v3866_v36 = vadd.f32 %v3810_v47, %v2813_v25  ;;  %v1432_v32 = vsel %vm1430_vm2, %v1431_v28, %v2563_v17 }
 0x1d0   : > { %v1628_v33 = vadd.s32 1, %v3850_v6  ;;  %v1681_v16 = vand.u32 8388607, %v1674_v21  ;;  %v1688_v41 = vand.u32 31, %v1686_v40  ;;  %v1429_v20 = vsel %vm1427_vm6, %v2561_v2, %v1428_v27 }
 0x1d1   : > { %v1514_v49 = vor.u32 4788187, %v1513_v18  ;;  %v1522_v61 = vsel %vm1437_vm7, %v1521_v44, %v3793_v23  ;;  %v1625_v47 = vmul.u32 %v3816_v31, %v1609_v30  ;;  %v1433_v42 = vsel %vm1426_vm8, %v1429_v20, %v1432_v32 }
 0x1d2   : > { %vm1627_vm14 = vc.u32 %v3862_v50, %v3849_v37  ;;  %v3883_v39 = vshrl.u32 %v1686_v40, 5  ;;  %v1689_v11 = vsub.s32 32, %v1688_v41  ;;  %v1434_v56 = vsel %vm1423_vm11, nan, %v1433_v42 }
 0x1d3   : > { %v1515_v48 = vand.u32 2147483647, %v1514_v49  ;;  %v1517_v24 = vcvt.s32.f32 %v1510_v57  ;;  %v1629_v26 = vsel %vm1627_vm14, %v1628_v33, %v3850_v6  ;;  %1543 = vst [vmem:[%s3135_s28 + $0x50] sm:$0xff] %v1434_v56  ;;  %v1691_v31 = vshll.u32 %v2671_v54, %v1688_v41 }
 0x1d4   : > { %v1630_v23 = vadd.s32 %v1629_v26, %v1625_v47  ;;  %v1692_v22 = vshrl.u32 %v2672_v58, %v1689_v11  ;;  %v1694_v44 = vshll.u32 %v2672_v58, %v1688_v41  ;;  %v1695_v29 = vshrl.u32 %v2673_v60, %v1689_v11 }
 0x1d5   : > { %v1518_v43 = vmul.f32 %v1517_v24, %v1515_v48  ;;  %v1697_v45 = vshll.u32 %v2673_v60, %v1688_v41  ;;  %v1698_v12 = vshrl.u32 %v2674_v62, %v1689_v11  ;;  %v1524_v4 = vsel %vm3855_vm12, 0, %v1522_v61 }
 0x1d6   : > { %v1631_v59 = vadd.s32 536870912, %v1630_v23  ;;  %v1700_v46 = vshll.u32 %v2674_v62, %v1688_v41  ;;  %v1701_v51 = vshrl.u32 %v2675_v0, %v1689_v11  ;;  %v1693_v35 = vor.u32 %v1692_v22, %v1691_v31 }
 0x1d7   : > { %v1519_v30 = vxor.u32 2147483648, %v1518_v43  ;;  %v1696_v8 = vor.u32 %v1695_v29, %v1694_v44  ;;  %v1699_v10 = vor.u32 %v1698_v12, %v1697_v45  ;;  %v1703_v53 = vshll.u32 %v2675_v0, %v1688_v41 }
 0x1d8   : > { %v3899_v6 = vshrl.u32 %v1631_v59, 30  ;;  %v1702_v2 = vor.u32 %v1701_v51, %v1700_v46  ;;  %v1704_v15 = vshrl.u32 %v2676_v7, %v1689_v11  ;;  %v1528_v17 = vadd.s32 3, %v1524_v4 }
 0x1d9   : > { %v1520_v34 = vsel %vm1437_vm7, %v1519_v30, %v1518_v43  ;;  %v1682_v28 = vor.u32 8388608, %v1681_v16  ;;  %vm1706_vm15 = vcmp.lt.s32.totalorder %v3883_v39, 1  ;;  %vm1709_vm0 = vcmp.lt.s32.totalorder %v3883_v39, 4 }
 0x1da   : > { %v1523_v3 = vsel %vm3855_vm12, %v3541_v52, %v1520_v34  ;;  %v1633_v40 = vshll.u32 %v3899_v6, 30  ;;  %v1705_v27 = vor.u32 %v1704_v15, %v1703_v53  ;;  %v1690_v57 = vshrl.u32 %v2671_v54, %v1689_v11 }
 0x1db   : > { %2564 = vcosq.f32 %v1523_v3  ;;  %v1714_v18 = vsel %vm1706_vm15, %v1693_v35, %v1696_v8  ;;  %v1715_v32 = vsel %vm1709_vm0, %v1702_v2, 920167782  ;;  %vm1708_vm1 = vcmp.lt.s32.totalorder %v3883_v39, 3 }
 0x1dc   : > { %2566 = vsinq.f32 %v1523_v3  ;;  %v3916_v33 = vsub.s32 %v1630_v23, %v1633_v40  ;;  %v1711_v63 = vsel %vm1709_vm0, %v1699_v10, 2102212464  ;;  %vm1707_vm2 = vcmp.lt.s32.totalorder %v3883_v39, 2 }
 0x1dd   : > { %v1716_v16 = vsel %vm1708_vm1, %v1699_v10, %v1715_v32  ;;  %v1718_v41 = vsel %vm1706_vm15, %v1696_v8, %v1699_v10  ;;  %v1722_v20 = vshll.u32 %v1682_v28, 8  ;;  %v1710_v61 = vsel %vm1706_vm15, %v1690_v57, %v1693_v35 }
 0x1de   : > { %v1636_v49 = vsub.s32 0, %v3916_v33  ;;  %v1717_v47 = vsel %vm1707_vm2, %v1714_v18, %v1716_v16  ;;  %v1719_v42 = vsel %vm1709_vm0, %v1705_v27, 1326507024  ;;  %v1712_v11 = vsel %vm1708_vm1, %v1696_v8, %v1711_v63 }
 0x1df   : > { %v1720_v56 = vsel %vm1708_vm1, %v1702_v2, %v1719_v42  ;;  %v3931_v48 = vmul.u32.u64.low %v1722_v20, %v1717_v47  ;;  %v3932_v24 = vmul.u32.u64.high %v1722_v20, %v1717_v47, %v3931_v48  ;;  %v1561_v26 = vmul.f32 %v3755_v55, %v2801_v19 }
 0x1e0   : > { %v2353_v23 = vmin.u32 %v1636_v49, %v3916_v33  ;;  %v1721_v31 = vsel %vm1707_vm2, %v1718_v41, %v1720_v56  ;;  %v1529_v22 = vand.u32 3, %v1528_v17  ;;  %v1781_v29 = vand.u32 2139095040, %v3866_v36 }
 0x1e1   : > { %v3940_v44 = vmul.u32.u64.low %v1722_v20, %v1721_v31  ;;  %v3941_v43 = vmul.u32.u64.high %v1722_v20, %v1721_v31, %v3940_v44  ;;  %v1562_v45 = vmul.f32 %v3722_v13, %v2791_v14  ;;  %v1713_v4 = vsel %vm1707_vm2, %v1710_v61, %v1712_v11 }
 0x1e2   : > { %v1638_v12 = vclz %v2353_v23  ;;  %v3949_v19 = vadd.f32 %v1561_v26, %v2813_v25  ;;  %vm1572_vm3 = vcmp.lt.s32.totalorder %v3759_v5, 0  ;;  %v1732_v59 = vadd.s32 1, %v3932_v24 }
 0x1e3   : > { %v1782_v46 = vshrl.u32 %v1781_v29, 23  ;;  %vm3955_vm4 = vcmp.le.f32.partialorder %v1570_v9, 0.7853982  ;;  %v1656_v13 = vsub.s32 4, %v3899_v6  ;;  %v1778_v39 = vand.u32 2147483647, %v3866_v36 }
 0x1e4   : > { %v2354_v30 = vadd.s32 4294967294, %v1638_v12  ;;  %vm1527_vm5 = vweird.f32 %v3541_v52  ;;  %vm1530_vm6 = vcmp.lt.s32.totalorder %v1529_v22, 2  ;;  %v1729_v25 = vmul.u32 %v1722_v20, %v1713_v4 }
 0x1e5   : > { %vm1731_vm7 = vc.u32 %v3941_v43, %v3931_v48  ;;  %v2360_v35 = vadd.s32 4294967169, %v1782_v46  ;;  %vm1531_vm8 = vcmp.eq.s32.totalorder %v1529_v22, 0  ;;  %vm1534_vm9 = vcmp.eq.s32.totalorder %v1529_v22, 2 }
 0x1e6   : > { %vm2355_vm10 = vcmp.lt.s32.totalorder %v2354_v30, 0  ;;  %v1733_v9 = vsel %vm1731_vm7, %v1732_v59, %v3932_v24  ;;  %v1626_v8 = vadd.s32 %v3849_v37, %v3862_v50  ;;  %v1657_v28 = vsel %vm1572_vm3, %v1656_v13, %v3899_v6 }
 0x1e7   : > { %v1641_v10 = vsel %vm2355_vm10, 0, %v2354_v30  ;;  %v1734_v2 = vadd.s32 %v1733_v9, %v1729_v25  ;;  %v1788_v53 = vadd.s32 1, %v2360_v35  ;;  %v1785_v3 = vand.u32 8388607, %v1778_v39 }
 0x1e8   : > { %v2565_v15 = vpop.eup %2564  ;;  %v1642_v34 = vsub.s32 32, %v1641_v10  ;;  %v1646_v17 = vsub.s32 4294967266, %v1641_v10  ;;  %v1643_v57 = vshll.u32 %v3916_v33, %v1641_v10  ;;  %v1659_v41 = vsel %vm3955_vm4, 0, %v1657_v28 }
 0x1e9   : > { %v2567_v40 = vpop.eup %2566  ;;  %v1535_v27 = vxor.u32 2147483648, %v2565_v15  ;;  %v1735_v18 = vadd.s32 536870912, %v1734_v2  ;;  %vm1789_vm11 = vcmp.gt.s32.totalorder %v1788_v53, 0  ;;  %v1786_v33 = vor.u32 8388608, %v1785_v3 }
 0x1ea   : > { %v1532_v37 = vxor.u32 2147483648, %v2567_v40  ;;  %v1644_v50 = vshrl.u32 %v1626_v8, %v1642_v34  ;;  %v1647_v32 = vadd.s32 127, %v1646_v17  ;;  %v1790_v63 = vsel %vm1789_vm11, %v1788_v53, 0 }
 0x1eb   : > { %v1536_v16 = vsel %vm1534_vm9, %v1535_v27, %v2567_v40  ;;  %v3976_v6 = vshrl.u32 %v1735_v18, 30  ;;  %v1792_v20 = vand.u32 31, %v1790_v63  ;;  %v1885_v24 = vand.u32 2139095040, %v3949_v19 }
 0x1ec   : > { %v1533_v49 = vsel %vm1531_vm8, %v2565_v15, %v1532_v37  ;;  %v1645_v61 = vor.u32 %v1644_v50, %v1643_v57  ;;  %v1648_v47 = vshll.u32 %v1647_v32, 23  ;;  %v3986_v23 = vmul.f32 %v3755_v55, %v2791_v14 }
 0x1ed   : > { %v1537_v42 = vsel %vm1530_vm6, %v1533_v49, %v1536_v16  ;;  %v1737_v11 = vshll.u32 %v3976_v6, 30  ;;  %v1793_v56 = vsub.s32 32, %v1792_v20  ;;  %v3990_v44 = vadd.f32 %v1562_v45, %v2908_v1 }
 0x1ee   : > { %v1538_v26 = vsel %vm1527_vm5, nan, %v1537_v42  ;;  %v1649_v31 = vor.u32 4788187, %v1648_v47  ;;  %v1663_v29 = vadd.s32 3, %v1659_v41  ;;  %v1652_v59 = vcvt.s32.f32 %v1645_v61 }
 0x1ef   : > { %1544 = vst [vmem:[%s3135_s28 + $0x58] sm:$0xff] %v1538_v26  ;;  %v3992_v22 = vsub.s32 %v1734_v2, %v1737_v11  ;;  %v1796_v12 = vshrl.u32 %v2672_v58, %v1793_v56  ;;  %v1730_v52 = vadd.s32 %v3931_v48, %v3941_v43  ;;  %v1799_v46 = vshrl.u32 %v2673_v60, %v1793_v56 }
 0x1f0   : > { %v1650_v4 = vand.u32 2147483647, %v1649_v31  ;;  %v1795_v55 = vshll.u32 %v2671_v54, %v1792_v20  ;;  %v4000_v30 = vshll.u32 %v1786_v33, 8  ;;  %v1886_v45 = vshrl.u32 %v1885_v24, 23 }
 0x1f1   : > { %v1740_v14 = vsub.s32 0, %v3992_v22  ;;  %v1791_v25 = vshrl.u32 %v1790_v63, 5  ;;  %v1798_v35 = vshll.u32 %v2672_v58, %v1792_v20  ;;  %v1802_v9 = vshrl.u32 %v2674_v62, %v1793_v56 }
 0x1f2   : > { %v1653_v13 = vmul.f32 %v1652_v59, %v1650_v4  ;;  %v1797_v10 = vor.u32 %v1796_v12, %v1795_v55  ;;  %v1801_v48 = vshll.u32 %v2673_v60, %v1792_v20  ;;  %v1805_v43 = vshrl.u32 %v2675_v0, %v1793_v56 }
 0x1f3   : > { %v2357_v8 = vmin.u32 %v1740_v14, %v3992_v22  ;;  %v1800_v53 = vor.u32 %v1799_v46, %v1798_v35  ;;  %v1804_v15 = vshll.u32 %v2674_v62, %v1792_v20  ;;  %v1808_v34 = vshrl.u32 %v2676_v7, %v1793_v56 }
 0x1f4   : > { %v1654_v2 = vxor.u32 2147483648, %v1653_v13  ;;  %vm1676_vm12 = vcmp.lt.s32.totalorder %v3778_v38, 0  ;;  %v1803_v28 = vor.u32 %v1802_v9, %v1801_v48  ;;  %v1807_v3 = vshll.u32 %v2675_v0, %v1792_v20 }
 0x1f5   : > { %v1742_v17 = vclz %v2357_v8  ;;  %v2364_v40 = vadd.s32 4294967169, %v1886_v45  ;;  %v1760_v57 = vsub.s32 4, %v3976_v6  ;;  %v1794_v18 = vshrl.u32 %v2671_v54, %v1793_v56 }
 0x1f6   : > { %v1655_v27 = vsel %vm1572_vm3, %v1654_v2, %v1653_v13  ;;  %v1806_v37 = vor.u32 %v1805_v43, %v1804_v15  ;;  %v1809_v63 = vor.u32 %v1808_v34, %v1807_v3  ;;  %vm1810_vm13 = vcmp.lt.s32.totalorder %v1791_v25, 1 }
 0x1f7   : > { %v1658_v50 = vsel %vm3955_vm4, %v3759_v5, %v1655_v27  ;;  %v2358_v32 = vadd.s32 4294967294, %v1742_v17  ;;  %vm1812_vm14 = vcmp.lt.s32.totalorder %v1791_v25, 3  ;;  %vm1813_vm15 = vcmp.lt.s32.totalorder %v1791_v25, 4 }
 0x1f8   : > { %2568 = vcosq.f32 %v1658_v50  ;;  %v1818_v16 = vsel %vm1810_vm13, %v1797_v10, %v1800_v53  ;;  %v1815_v41 = vsel %vm1813_vm15, %v1803_v28, 2102212464  ;;  %v1819_v20 = vsel %vm1813_vm15, %v1806_v37, 920167782 }
 0x1f9   : > { %2570 = vsinq.f32 %v1658_v50  ;;  %vm2359_vm0 = vcmp.lt.s32.totalorder %v2358_v32, 0  ;;  %vm1811_vm1 = vcmp.lt.s32.totalorder %v1791_v25, 2  ;;  %v1814_v61 = vsel %vm1810_vm13, %v1794_v18, %v1797_v10 }
 0x1fa   : > { %v1745_v49 = vsel %vm2359_vm0, 0, %v2358_v32  ;;  %v1820_v47 = vsel %vm1812_vm14, %v1803_v28, %v1819_v20  ;;  %v1822_v11 = vsel %vm1810_vm13, %v1800_v53, %v1803_v28  ;;  %v1816_v56 = vsel %vm1812_vm14, %v1800_v53, %v1815_v41 }
 0x1fb   : > { %v1746_v51 = vsub.s32 32, %v1745_v49  ;;  %v1750_v33 = vsub.s32 4294967266, %v1745_v49  ;;  %v1821_v42 = vsel %vm1811_vm1, %v1818_v16, %v1820_v47  ;;  %v1823_v24 = vsel %vm1813_vm15, %v1809_v63, 1326507024 }
 0x1fc   : > { %v4025_v26 = vmul.u32.u64.low %v4000_v30, %v1821_v42  ;;  %v4026_v31 = vmul.u32.u64.high %v4000_v30, %v1821_v42, %v4025_v26  ;;  %v1747_v12 = vshll.u32 %v3992_v22, %v1745_v49  ;;  %v1824_v46 = vsel %vm1812_vm14, %v1806_v37, %v1823_v24 }
 0x1fd   : > { %v1748_v4 = vshrl.u32 %v1730_v52, %v1746_v51  ;;  %v1751_v59 = vadd.s32 127, %v1750_v33  ;;  %v1664_v14 = vand.u32 3, %v1663_v29  ;;  %v1761_v55 = vsel %vm1676_vm12, %v1760_v57, %v3976_v6 }
 0x1fe   : > { %v1825_v45 = vsel %vm1811_vm1, %v1822_v11, %v1824_v46  ;;  %v1892_v13 = vadd.s32 1, %v2364_v40  ;;  %v1817_v22 = vsel %vm1811_vm1, %v1814_v61, %v1816_v56  ;;  %v1836_v52 = vadd.s32 1, %v4026_v31 }
 0x1ff   : > { %v1749_v35 = vor.u32 %v1748_v4, %v1747_v12  ;;  %v1752_v9 = vshll.u32 %v1751_v59, 23  ;;  %v4036_v8 = vmul.u32.u64.low %v4000_v30, %v1825_v45  ;;  %v4037_v10 = vmul.u32.u64.high %v4000_v30, %v1825_v45, %v4036_v8 }
 0x200   : > { %v1882_v48 = vand.u32 2147483647, %v3949_v19  ;;  %vm1893_vm2 = vcmp.gt.s32.totalorder %v1892_v13, 0  ;;  %v4044_v29 = vadd.f32 %v3986_v23, %v2908_v1  ;;  %vm4048_vm3 = vcmp.le.f32.partialorder %v1674_v21, 0.7853982 }
 0x201   : > { %v1753_v43 = vor.u32 4788187, %v1752_v9  ;;  %v1894_v2 = vsel %vm1893_vm2, %v1892_v13, 0  ;;  %vm1662_vm4 = vweird.f32 %v3759_v5  ;;  %vm1665_vm5 = vcmp.lt.s32.totalorder %v1664_v14, 2 }
 0x202   : > { %vm1666_vm6 = vcmp.eq.s32.totalorder %v1664_v14, 0  ;;  %v1763_v25 = vsel %vm4048_vm3, 0, %v1761_v55  ;;  %v1896_v53 = vand.u32 31, %v1894_v2  ;;  %v1756_v34 = vcvt.s32.f32 %v1749_v35 }
 0x203   : > { %v1754_v15 = vand.u32 2147483647, %v1753_v43  ;;  %v1833_v1 = vmul.u32 %v4000_v30, %v1817_v22  ;;  %vm1835_vm7 = vc.u32 %v4037_v10, %v4025_v26  ;;  %vm1669_vm8 = vcmp.eq.s32.totalorder %v1664_v14, 2 }
 0x204   : > { %v1837_v21 = vsel %vm1835_vm7, %v1836_v52, %v4026_v31  ;;  %v1889_v23 = vand.u32 8388607, %v1882_v48  ;;  %v1897_v17 = vsub.s32 32, %v1896_v53  ;;  %v1767_v40 = vadd.s32 3, %v1763_v25 }
 0x205   : > { %v2569_v28 = vpop.eup %2568  ;;  %v1757_v3 = vmul.f32 %v1756_v34, %v1754_v15  ;;  %v1838_v27 = vadd.s32 %v1837_v21, %v1833_v1  ;;  %v4061_v57 = vshrl.u32 %v1894_v2, 5  ;;  %v1899_v30 = vshll.u32 %v2671_v54, %v1896_v53 }
 0x206   : > { %v2571_v18 = vpop.eup %2570  ;;  %v1670_v37 = vxor.u32 2147483648, %v2569_v28  ;;  %v1900_v50 = vshrl.u32 %v2672_v58, %v1897_v17  ;;  %v1903_v32 = vshrl.u32 %v2673_v60, %v1897_v17  ;;  %v1906_v20 = vshrl.u32 %v2674_v62, %v1897_v17 }
 0x207   : > { %v1667_v63 = vxor.u32 2147483648, %v2571_v18  ;;  %v1758_v16 = vxor.u32 2147483648, %v1757_v3  ;;  %v1839_v41 = vadd.s32 536870912, %v1838_v27  ;;  %v1902_v61 = vshll.u32 %v2672_v58, %v1896_v53 }
 0x208   : > { %v1671_v49 = vsel %vm1669_vm8, %v1670_v37, %v2571_v18  ;;  %v1905_v47 = vshll.u32 %v2673_v60, %v1896_v53  ;;  %v1909_v51 = vshrl.u32 %v2675_v0, %v1897_v17  ;;  %v1908_v56 = vshll.u32 %v2674_v62, %v1896_v53 }
 0x209   : > { %v1668_v33 = vsel %vm1666_vm6, %v2569_v28, %v1667_v63  ;;  %v1759_v42 = vsel %vm1676_vm12, %v1758_v16, %v1757_v3  ;;  %v1840_v11 = vshrl.u32 %v1839_v41, 30  ;;  %v1901_v12 = vor.u32 %v1900_v50, %v1899_v30 }
 0x20a   : > { %v1672_v24 = vsel %vm1665_vm5, %v1668_v33, %v1671_v49  ;;  %v1762_v31 = vsel %vm4048_vm3, %v3778_v38, %v1759_v42  ;;  %v1904_v4 = vor.u32 %v1903_v32, %v1902_v61  ;;  %v1907_v55 = vor.u32 %v1906_v20, %v1905_v47 }
 0x20b   : > { %v1673_v59 = vsel %vm1662_vm4, nan, %v1672_v24  ;;  %2572 = vcosq.f32 %v1762_v31  ;;  %v1841_v46 = vshll.u32 %v1840_v11, 30  ;;  %vm1780_vm9 = vcmp.lt.s32.totalorder %v3866_v36, 0 }
 0x20c   : > { %2574 = vsinq.f32 %v1762_v31  ;;  %v1910_v45 = vor.u32 %v1909_v51, %v1908_v56  ;;  %v1911_v13 = vshll.u32 %v2675_v0, %v1896_v53  ;;  %v1912_v14 = vshrl.u32 %v2676_v7, %v1897_v17  ;;  %2194 = vst [vmem:[%s3135_s28 + $0x60] sm:$0xff] %v1673_v59 }
 0x20d   : > { %v4085_v35 = vand.u32 3, %v1767_v40  ;;  %v4087_v9 = vsub.s32 %v1838_v27, %v1841_v46  ;;  %v1890_v8 = vor.u32 8388608, %v1889_v23  ;;  %v1989_v5 = vand.u32 2139095040, %v3990_v44 }
 0x20e   : > { %v1864_v22 = vsub.s32 4, %v1840_v11  ;;  %v1898_v52 = vshrl.u32 %v2671_v54, %v1897_v17  ;;  %v1913_v6 = vor.u32 %v1912_v14, %v1911_v13  ;;  %vm1914_vm10 = vcmp.lt.s32.totalorder %v4061_v57, 1 }
 0x20f   : > { %v1844_v43 = vsub.s32 0, %v4087_v9  ;;  %vm1916_vm11 = vcmp.lt.s32.totalorder %v4061_v57, 3  ;;  %vm1917_vm12 = vcmp.lt.s32.totalorder %v4061_v57, 4  ;;  %v1922_v2 = vsel %vm1914_vm10, %v1901_v12, %v1904_v4 }
 0x210   : > { %v1919_v25 = vsel %vm1917_vm12, %v1907_v55, 2102212464  ;;  %v1923_v53 = vsel %vm1917_vm12, %v1910_v45, 920167782  ;;  %v1926_v15 = vsel %vm1914_vm10, %v1904_v4, %v1907_v55  ;;  %v1927_v34 = vsel %vm1917_vm12, %v1913_v6, 1326507024 }
 0x211   : > { %v2361_v1 = vmin.u32 %v1844_v43, %v4087_v9  ;;  %vm1915_vm13 = vcmp.lt.s32.totalorder %v4061_v57, 2  ;;  %v1924_v21 = vsel %vm1916_vm11, %v1907_v55, %v1923_v53  ;;  %v1928_v23 = vsel %vm1916_vm11, %v1910_v45, %v1927_v34 }
 0x212   : > { %v1925_v17 = vsel %vm1915_vm13, %v1922_v2, %v1924_v21  ;;  %v1929_v28 = vsel %vm1915_vm13, %v1926_v15, %v1928_v23  ;;  %v1930_v3 = vshll.u32 %v1890_v8, 8  ;;  %v1990_v40 = vshrl.u32 %v1989_v5, 23 }
 0x213   : > { %v1846_v27 = vclz %v2361_v1  ;;  %v1918_v18 = vsel %vm1914_vm10, %v1898_v52, %v1901_v12  ;;  %v1920_v37 = vsel %vm1916_vm11, %v1904_v4, %v1919_v25  ;;  %v1986_v30 = vand.u32 2147483647, %v3990_v44 }
 0x214   : > { %v4114_v50 = vmul.u32.u64.low %v1930_v3, %v1929_v28  ;;  %v4115_v32 = vmul.u32.u64.high %v1930_v3, %v1929_v28, %v4114_v50  ;;  %v4117_v63 = vmul.u32.u64.low %v1930_v3, %v1925_v17  ;;  %v4118_v16 = vmul.u32.u64.high %v1930_v3, %v1925_v17, %v4117_v63 }
 0x215   : > { %vm1766_vm14 = vweird.f32 %v3778_v38  ;;  %vm4124_vm15 = vcmp.le.f32.partialorder %v1778_v39, 0.7853982  ;;  %v2362_v20 = vadd.s32 4294967294, %v1846_v27  ;;  %v1865_v49 = vsel %vm1780_vm9, %v1864_v22, %v1840_v11 }
 0x216   : > { %v2368_v61 = vadd.s32 4294967169, %v1990_v40  ;;  %vm1769_vm0 = vcmp.lt.s32.totalorder %v4085_v35, 2  ;;  %vm1770_vm1 = vcmp.eq.s32.totalorder %v4085_v35, 0  ;;  %vm1773_vm2 = vcmp.eq.s32.totalorder %v4085_v35, 2 }
 0x217   : > { %v1921_v47 = vsel %vm1915_vm13, %v1918_v18, %v1920_v37  ;;  %v1834_v39 = vadd.s32 %v4025_v26, %v4037_v10  ;;  %vm2363_vm3 = vcmp.lt.s32.totalorder %v2362_v20, 0  ;;  %v4139_v51 = vand.u32 8388607, %v1986_v30 }
 0x218   : > { %v1996_v33 = vadd.s32 1, %v2368_v61  ;;  %v2573_v42 = vpop.eup %2572  ;;  %v1849_v11 = vsel %vm2363_vm3, 0, %v2362_v20  ;;  %v1867_v56 = vsel %vm4124_vm15, 0, %v1865_v49  ;;  %vm1939_vm4 = vc.u32 %v4115_v32, %v4117_v63 }
 0x219   : > { %v1940_v57 = vadd.s32 1, %v4118_v16  ;;  %v2575_v24 = vpop.eup %2574  ;;  %v1774_v31 = vxor.u32 2147483648, %v2573_v42  ;;  %v1850_v12 = vsub.s32 32, %v1849_v11  ;;  %v1854_v26 = vsub.s32 4294967266, %v1849_v11 }
 0x21a   : > { %v1937_v10 = vmul.u32 %v1930_v3, %v1921_v47  ;;  %v1771_v4 = vxor.u32 2147483648, %v2575_v24  ;;  %v1851_v59 = vshll.u32 %v4087_v9, %v1849_v11  ;;  %vm1997_vm5 = vcmp.gt.s32.totalorder %v1996_v33, 0 }
 0x21b   : > { %v1941_v46 = vsel %vm1939_vm4, %v1940_v57, %v4118_v16  ;;  %v1775_v55 = vsel %vm1773_vm2, %v1774_v31, %v2575_v24  ;;  %v1852_v45 = vshrl.u32 %v1834_v39, %v1850_v12  ;;  %v1855_v13 = vadd.s32 127, %v1854_v26 }
 0x21c   : > { %v1942_v14 = vadd.s32 %v1941_v46, %v1937_v10  ;;  %v1772_v8 = vsel %vm1770_vm1, %v2573_v42, %v1771_v4  ;;  %v1871_v5 = vadd.s32 3, %v1867_v56  ;;  %v1998_v22 = vsel %vm1997_vm5, %v1996_v33, 0 }
 0x21d   : > { %v2093_v52 = vand.u32 2139095040, %v4044_v29  ;;  %v1776_v9 = vsel %vm1769_vm0, %v1772_v8, %v1775_v55  ;;  %v1853_v6 = vor.u32 %v1852_v45, %v1851_v59  ;;  %v1856_v43 = vshll.u32 %v1855_v13, 23 }
 0x21e   : > { %v1943_v2 = vadd.s32 536870912, %v1942_v14  ;;  %v1777_v25 = vsel %vm1766_vm14, nan, %v1776_v9  ;;  %v2000_v53 = vand.u32 31, %v1998_v22  ;;  %v4160_v1 = vand.u32 3, %v1871_v5 }
 0x21f   : > { %v1857_v15 = vor.u32 4788187, %v1856_v43  ;;  %2195 = vst [vmem:[%s3135_s28 + $0x68] sm:$0xff] %v1777_v25  ;;  %v2094_v23 = vshrl.u32 %v2093_v52, 23  ;;  %v1860_v28 = vcvt.s32.f32 %v1853_v6  ;;  %v1994_v3 = vor.u32 8388608, %v4139_v51 }
 0x220   : > { %v4157_v34 = vshrl.u32 %v1943_v2, 30  ;;  %v2001_v21 = vsub.s32 32, %v2000_v53  ;;  %v2090_v18 = vand.u32 2147483647, %v4044_v29  ;;  %v2003_v16 = vshll.u32 %v2671_v54, %v2000_v53 }
 0x221   : > { %v1858_v17 = vand.u32 2147483647, %v1857_v15  ;;  %v1999_v49 = vshrl.u32 %v1998_v22, 5  ;;  %v2006_v61 = vshll.u32 %v2672_v58, %v2000_v53  ;;  %v2009_v47 = vshll.u32 %v2673_v60, %v2000_v53 }
 0x222   : > { %v1945_v35 = vshll.u32 %v4157_v34, 30  ;;  %v2004_v40 = vshrl.u32 %v2672_v58, %v2001_v21  ;;  %v2007_v38 = vshrl.u32 %v2673_v60, %v2001_v21  ;;  %v2010_v27 = vshrl.u32 %v2674_v62, %v2001_v21 }
 0x223   : > { %v1861_v37 = vmul.f32 %v1860_v28, %v1858_v17  ;;  %v2013_v20 = vshrl.u32 %v2675_v0, %v2001_v21  ;;  %v2372_v39 = vadd.s32 4294967169, %v2094_v23  ;;  %v2012_v11 = vshll.u32 %v2674_v62, %v2000_v53 }
 0x224   : > { %v4168_v50 = vsub.s32 %v1942_v14, %v1945_v35  ;;  %v2005_v42 = vor.u32 %v2004_v40, %v2003_v16  ;;  %v2008_v56 = vor.u32 %v2007_v38, %v2006_v61  ;;  %v2011_v57 = vor.u32 %v2010_v27, %v2009_v47 }
 0x225   : > { %v1862_v51 = vxor.u32 2147483648, %v1861_v37  ;;  %v2015_v24 = vshll.u32 %v2675_v0, %v2000_v53  ;;  %v2016_v31 = vshrl.u32 %v2676_v7, %v2001_v21  ;;  %v2014_v10 = vor.u32 %v2013_v20, %v2012_v11 }
 0x226   : > { %v1948_v33 = vsub.s32 0, %v4168_v50  ;;  %v4181_v4 = vshll.u32 %v1994_v3, 8  ;;  %v2002_v46 = vshrl.u32 %v2671_v54, %v2001_v21  ;;  %v2100_v45 = vadd.s32 1, %v2372_v39 }
 0x227   : > { %v1863_v12 = vsel %vm1780_vm9, %v1862_v51, %v1861_v37  ;;  %v2017_v55 = vor.u32 %v2016_v31, %v2015_v24  ;;  %vm2018_vm6 = vcmp.lt.s32.totalorder %v1999_v49, 1  ;;  %vm2021_vm7 = vcmp.lt.s32.totalorder %v1999_v49, 4 }
 0x228   : > { %v2365_v26 = vmin.u32 %v1948_v33, %v4168_v50  ;;  %v1866_v59 = vsel %vm4124_vm15, %v3866_v36, %v1863_v12  ;;  %vm2019_vm8 = vcmp.lt.s32.totalorder %v1999_v49, 2  ;;  %v2023_v14 = vsel %vm2021_vm7, %v2011_v57, 2102212464 }
 0x229   : > { %2576 = vcosq.f32 %v1866_v59  ;;  %v2026_v8 = vsel %vm2018_vm6, %v2005_v42, %v2008_v56  ;;  %vm2020_vm9 = vcmp.lt.s32.totalorder %v1999_v49, 3  ;;  %v2027_v22 = vsel %vm2021_vm7, %v2014_v10, 920167782 }
 0x22a   : > { %v1950_v13 = vclz %v2365_v26  ;;  %2578 = vsinq.f32 %v1866_v59  ;;  %v2030_v52 = vsel %vm2018_vm6, %v2008_v56, %v2011_v57  ;;  %v2022_v9 = vsel %vm2018_vm6, %v2002_v46, %v2005_v42 }
 0x22b   : > { %v2028_v6 = vsel %vm2020_vm9, %v2011_v57, %v2027_v22  ;;  %v2031_v41 = vsel %vm2021_vm7, %v2017_v55, 1326507024  ;;  %vm2101_vm10 = vcmp.gt.s32.totalorder %v2100_v45, 0  ;;  %v2024_v43 = vsel %vm2020_vm9, %v2008_v56, %v2023_v14 }
 0x22c   : > { %v2366_v5 = vadd.s32 4294967294, %v1950_v13  ;;  %v2029_v2 = vsel %vm2019_vm8, %v2026_v8, %v2028_v6  ;;  %v2032_v25 = vsel %vm2020_vm9, %v2014_v10, %v2031_v41  ;;  %v1938_v17 = vadd.s32 %v4117_v63, %v4115_v32 }
 0x22d   : > { %v2033_v15 = vsel %vm2019_vm8, %v2030_v52, %v2032_v25  ;;  %v4190_v21 = vmul.u32.u64.low %v4181_v4, %v2029_v2  ;;  %v4191_v23 = vmul.u32.u64.high %v4181_v4, %v2029_v2, %v4190_v21  ;;  %v2102_v3 = vsel %vm2101_vm10, %v2100_v45, 0 }
 0x22e   : > { %vm2367_vm11 = vcmp.lt.s32.totalorder %v2366_v5, 0  ;;  %v2025_v40 = vsel %vm2019_vm8, %v2022_v9, %v2024_v43  ;;  %v4198_v38 = vmul.u32.u64.low %v4181_v4, %v2033_v15  ;;  %v4199_v27 = vmul.u32.u64.high %v4181_v4, %v2033_v15, %v4198_v38 }
 0x22f   : > { %v1953_v53 = vsel %vm2367_vm11, 0, %v2366_v5  ;;  %v2104_v37 = vand.u32 31, %v2102_v3  ;;  %vm1874_vm12 = vcmp.eq.s32.totalorder %v4160_v1, 0  ;;  %vm1884_vm13 = vcmp.lt.s32.totalorder %v3949_v19, 0 }
 0x230   : > { %v1954_v28 = vsub.s32 32, %v1953_v53  ;;  %v1958_v35 = vsub.s32 4294967266, %v1953_v53  ;;  %v1955_v16 = vshll.u32 %v4168_v50, %v1953_v53  ;;  %vm1873_vm14 = vcmp.lt.s32.totalorder %v4160_v1, 2 }
 0x231   : > { %vm1877_vm15 = vcmp.eq.s32.totalorder %v4160_v1, 2  ;;  %v2044_v32 = vadd.s32 1, %v4191_v23  ;;  %v2097_v63 = vand.u32 8388607, %v2090_v18  ;;  %v2105_v49 = vsub.s32 32, %v2104_v37 }
 0x232   : > { %v1956_v20 = vshrl.u32 %v1938_v17, %v1954_v28  ;;  %v1959_v61 = vadd.s32 127, %v1958_v35  ;;  %vm1870_vm0 = vweird.f32 %v3866_v36  ;;  %v1968_v51 = vsub.s32 4, %v4157_v34 }
 0x233   : > { %v2041_v50 = vmul.u32 %v4181_v4, %v2025_v40  ;;  %vm2043_vm1 = vc.u32 %v4199_v27, %v4190_v21  ;;  %v4214_v33 = vshrl.u32 %v2102_v3, 5  ;;  %v2107_v42 = vshll.u32 %v2671_v54, %v2104_v37 }
 0x234   : > { %v1957_v47 = vor.u32 %v1956_v20, %v1955_v16  ;;  %v1960_v39 = vshll.u32 %v1959_v61, 23  ;;  %v2108_v11 = vshrl.u32 %v2672_v58, %v2105_v49  ;;  %vm4220_vm2 = vcmp.le.f32.partialorder %v1882_v48, 0.7853982 }
 0x235   : > { %v2045_v24 = vsel %vm2043_vm1, %v2044_v32, %v4191_v23  ;;  %v2110_v31 = vshll.u32 %v2672_v58, %v2104_v37  ;;  %v2111_v12 = vshrl.u32 %v2673_v60, %v2105_v49  ;;  %v2113_v4 = vshll.u32 %v2673_v60, %v2104_v37 }
 0x236   : > { %v1961_v57 = vor.u32 4788187, %v1960_v39  ;;  %v2577_v26 = vpop.eup %2576  ;;  %v2046_v10 = vadd.s32 %v2045_v24, %v2041_v50  ;;  %v2116_v59 = vshll.u32 %v2674_v62, %v2104_v37  ;;  %v2117_v46 = vshrl.u32 %v2675_v0, %v2105_v49 }
 0x237   : > { %v2579_v55 = vpop.eup %2578  ;;  %v1878_v48 = vxor.u32 2147483648, %v2577_v26  ;;  %v1964_v13 = vcvt.s32.f32 %v1957_v47  ;;  %v2114_v14 = vshrl.u32 %v2674_v62, %v2105_v49  ;;  %v2109_v22 = vor.u32 %v2108_v11, %v2107_v42 }
 0x238   : > { %v1962_v45 = vand.u32 2147483647, %v1961_v57  ;;  %v1875_v8 = vxor.u32 2147483648, %v2579_v55  ;;  %v2047_v5 = vadd.s32 536870912, %v2046_v10  ;;  %v2112_v58 = vor.u32 %v2111_v12, %v2110_v31 }
 0x239   : > { %v1879_v52 = vsel %vm1877_vm15, %v1878_v48, %v2579_v55  ;;  %v2118_v6 = vor.u32 %v2117_v46, %v2116_v59  ;;  %v2120_v60 = vshrl.u32 %v2676_v7, %v2105_v49  ;;  %v1969_v43 = vsel %vm1884_vm13, %v1968_v51, %v4157_v34 }
 0x23a   : > { %v1965_v9 = vmul.f32 %v1964_v13, %v1962_v45  ;;  %v1876_v41 = vsel %vm1874_vm12, %v2577_v26, %v1875_v8  ;;  %v4239_v62 = vshrl.u32 %v2047_v5, 30  ;;  %v2098_v2 = vor.u32 8388608, %v2097_v63 }
 0x23b   : > { %v1880_v25 = vsel %vm1873_vm14, %v1876_v41, %v1879_v52  ;;  %v2115_v15 = vor.u32 %v2114_v14, %v2113_v4  ;;  %v2119_v23 = vshll.u32 %v2675_v0, %v2104_v37  ;;  %vm2122_vm3 = vcmp.lt.s32.totalorder %v4214_v33, 1 }
 0x23c   : > { %v1966_v53 = vxor.u32 2147483648, %v1965_v9  ;;  %v1881_v7 = vsel %vm1870_vm0, nan, %v1880_v25  ;;  %v2049_v17 = vshll.u32 %v4239_v62, 30  ;;  %vm2125_vm4 = vcmp.lt.s32.totalorder %v4214_v33, 4 }
 0x23d   : > { %v2121_v28 = vor.u32 %v2120_v60, %v2119_v23  ;;  %v2130_v1 = vsel %vm2122_vm3, %v2109_v22, %v2112_v58  ;;  %v2131_v35 = vsel %vm2125_vm4, %v2118_v6, 920167782  ;;  %2196 = vst [vmem:[%s3135_s28 + $0x70] sm:$0xff] %v1881_v7  ;;  %vm2124_vm5 = vcmp.lt.s32.totalorder %v4214_v33, 3 }
 0x23e   : > { %v1967_v34 = vsel %vm1884_vm13, %v1966_v53, %v1965_v9  ;;  %v2050_v36 = vsub.s32 %v2046_v10, %v2049_v17  ;;  %v2138_v3 = vshll.u32 %v2098_v2, 8  ;;  %v2106_v40 = vshrl.u32 %v2671_v54, %v2105_v49 }
 0x23f   : > { %v1970_v0 = vsel %vm4220_vm2, %v3949_v19, %v1967_v34  ;;  %vm2123_vm6 = vcmp.lt.s32.totalorder %v4214_v33, 2  ;;  %v2132_v38 = vsel %vm2124_vm5, %v2115_v15, %v2131_v35  ;;  %v2127_v16 = vsel %vm2125_vm4, %v2115_v15, 2102212464 }
 0x240   : > { %2580 = vcosq.f32 %v1970_v0  ;;  %v2052_v37 = vsub.s32 0, %v2050_v36  ;;  %v2133_v20 = vsel %vm2123_vm6, %v2130_v1, %v2132_v38  ;;  %v2134_v61 = vsel %vm2122_vm3, %v2112_v58, %v2115_v15 }
 0x241   : > { %2582 = vsinq.f32 %v1970_v0  ;;  %v2135_v32 = vsel %vm2125_vm4, %v2121_v28, 1326507024  ;;  %v4272_v54 = vmul.u32.u64.low %v2138_v3, %v2133_v20  ;;  %v4273_v63 = vmul.u32.u64.high %v2138_v3, %v2133_v20, %v4272_v54 }
 0x242   : > { %v1971_v49 = vsel %vm4220_vm2, 0, %v1969_v43  ;;  %v2369_v47 = vmin.u32 %v2052_v37, %v2050_v36  ;;  %v2136_v39 = vsel %vm2124_vm5, %v2118_v6, %v2135_v32  ;;  %v2126_v51 = vsel %vm2122_vm3, %v2106_v40, %v2109_v22 }
 0x243   : > { %v2128_v50 = vsel %vm2124_vm5, %v2112_v58, %v2127_v16  ;;  %v2137_v42 = vsel %vm2123_vm6, %v2134_v61, %v2136_v39  ;;  %v1975_v57 = vadd.s32 3, %v1971_v49  ;;  %v2148_v26 = vadd.s32 1, %v4273_v63 }
 0x244   : > { %v2054_v11 = vclz %v2369_v47  ;;  %v4286_v24 = vmul.u32.u64.low %v2138_v3, %v2137_v42  ;;  %v4287_v31 = vmul.u32.u64.high %v2138_v3, %v2137_v42, %v4286_v24  ;;  %v2129_v12 = vsel %vm2123_vm6, %v2126_v51, %v2128_v50 }
 0x245   : > { %v1976_v10 = vand.u32 3, %v1975_v57  ;;  %v2145_v59 = vmul.u32 %v2138_v3, %v2129_v12  ;;  %v2042_v46 = vadd.s32 %v4190_v21, %v4199_v27  ;;  %vm1974_vm12 = vweird.f32 %v3949_v19 }
 0x246   : > { %v2370_v56 = vadd.s32 4294967294, %v2054_v11  ;;  %vm2147_vm8 = vc.u32 %v4287_v31, %v4272_v54  ;;  %vm1988_vm13 = vcmp.lt.s32.totalorder %v3990_v44, 0  ;;  %v2072_v1 = vsub.s32 4, %v4239_v62 }
 0x247   : > { %v2149_v45 = vsel %vm2147_vm8, %v2148_v26, %v4273_v63  ;;  %vm1981_vm9 = vcmp.eq.s32.totalorder %v1976_v10, 2  ;;  %vm1978_vm10 = vcmp.eq.s32.totalorder %v1976_v10, 0  ;;  %vm1977_vm11 = vcmp.lt.s32.totalorder %v1976_v10, 2 }
 0x248   : > { %vm2371_vm7 = vcmp.lt.s32.totalorder %v2370_v56, 0  ;;  %v2150_v13 = vadd.s32 %v2149_v45, %v2145_v59  ;;  %vm1987_vm14 = vcmp.le.f32.partialorder %v1986_v30, 0.7853982  ;;  %v2073_v3 = vsel %vm1988_vm13, %v2072_v1, %v4239_v62 }
 0x249   : > { %v2057_v4 = vsel %vm2371_vm7, 0, %v2370_v56  ;;  %v2075_v38 = vsel %vm1987_vm14, 0, %v2073_v3  ;;  %v2146_v16 = vadd.s32 %v4272_v54, %v4287_v31  ;;  %vm2078_vm3 = vweird.f32 %v3990_v44 }
 0x24a   : > { %v2058_v55 = vsub.s32 32, %v2057_v4  ;;  %v2062_v48 = vsub.s32 4294967266, %v2057_v4  ;;  %v2059_v33 = vshll.u32 %v2050_v36, %v2057_v4  ;;  %v2151_v52 = vadd.s32 536870912, %v2150_v13 }
 0x24b   : > { %v2079_v32 = vadd.s32 3, %v2075_v38  ;;  %vm2092_vm4 = vcmp.lt.s32.totalorder %v4044_v29, 0  ;;  %vm2091_vm5 = vcmp.le.f32.partialorder %v2090_v18, 0.7853982 }
 0x24c   : > { %v2060_v8 = vshrl.u32 %v2042_v46, %v2058_v55  ;;  %v2063_v5 = vadd.s32 127, %v2062_v48  ;;  %v4297_v21 = vshrl.u32 %v2151_v52, 30 }
 0x24d   : > { %v2581_v14 = vpop.eup %2580  ;;  %v2080_v51 = vand.u32 3, %v2079_v32 }
 0x24e   : > { %v2583_v22 = vpop.eup %2582  ;;  %v1982_v58 = vxor.u32 2147483648, %v2581_v14  ;;  %v2061_v6 = vor.u32 %v2060_v8, %v2059_v33  ;;  %v2064_v60 = vshll.u32 %v2063_v5, 23  ;;  %v2153_v25 = vshll.u32 %v4297_v21, 30 }
 0x24f   : > { %v1979_v9 = vxor.u32 2147483648, %v2583_v22  ;;  %vm2085_vm0 = vcmp.eq.s32.totalorder %v2080_v51, 2  ;;  %vm2082_vm1 = vcmp.eq.s32.totalorder %v2080_v51, 0  ;;  %vm2081_vm2 = vcmp.lt.s32.totalorder %v2080_v51, 2 }
 0x250   : > { %v1983_v41 = vsel %vm1981_vm9, %v1982_v58, %v2583_v22  ;;  %v2065_v43 = vor.u32 4788187, %v2064_v60  ;;  %v2068_v23 = vcvt.s32.f32 %v2061_v6  ;;  %v2154_v7 = vsub.s32 %v2150_v13, %v2153_v25 }
 0x251   : > { %v1980_v27 = vsel %vm1978_vm10, %v2581_v14, %v1979_v9  ;;  %v2176_v4 = vsub.s32 4, %v4297_v21  ;;  %vm2182_vm9 = vweird.f32 %v4044_v29 }
 0x252   : > { %v1984_v2 = vsel %vm1977_vm11, %v1980_v27, %v1983_v41  ;;  %v2066_v15 = vand.u32 2147483647, %v2065_v43  ;;  %v2156_v34 = vsub.s32 0, %v2154_v7 }
 0x253   : > { %v1985_v53 = vsel %vm1974_vm12, nan, %v1984_v2  ;;  %v2177_v48 = vsel %vm2092_vm4, %v2176_v4, %v4297_v21 }
 0x254   : > { %2197 = vst [vmem:[%s3135_s28 + $0x78] sm:$0xff] %v1985_v53  ;;  %v2069_v17 = vmul.f32 %v2068_v23, %v2066_v15  ;;  %v2373_v35 = vmin.u32 %v2156_v34, %v2154_v7 }
 0x256   : > { %v2070_v28 = vxor.u32 2147483648, %v2069_v17  ;;  %v2158_v36 = vclz %v2373_v35 }
 0x258   : > { %v2071_v19 = vsel %vm1988_vm13, %v2070_v28, %v2069_v17  ;;  %v2374_v40 = vadd.s32 4294967294, %v2158_v36 }
 0x259   : > { %v2074_v0 = vsel %vm1987_vm14, %v3990_v44, %v2071_v19  ;;  %v2179_v44 = vsel %vm2091_vm5, 0, %v2177_v48 }
 0x25a   : > { %2584 = vcosq.f32 %v2074_v0  ;;  %vm2375_vm15 = vcmp.lt.s32.totalorder %v2374_v40, 0  ;;  %v2183_v45 = vadd.s32 3, %v2179_v44 }
 0x25b   : > { %2586 = vsinq.f32 %v2074_v0  ;;  %v2161_v37 = vsel %vm2375_vm15, 0, %v2374_v40 }
 0x25c   : > { %v2162_v20 = vsub.s32 32, %v2161_v37  ;;  %v2166_v61 = vsub.s32 4294967266, %v2161_v37  ;;  %v2163_v63 = vshll.u32 %v2154_v7, %v2161_v37  ;;  %v2184_v13 = vand.u32 3, %v2183_v45 }
 0x25e   : > { %v2164_v30 = vshrl.u32 %v2146_v16, %v2162_v20  ;;  %v2167_v49 = vadd.s32 127, %v2166_v61  ;;  %vm2189_vm6 = vcmp.eq.s32.totalorder %v2184_v13, 2  ;;  %vm2186_vm7 = vcmp.eq.s32.totalorder %v2184_v13, 0 }
 0x25f   : > { %vm2185_vm8 = vcmp.lt.s32.totalorder %v2184_v13, 2 }
 0x260   : > { %v2165_v47 = vor.u32 %v2164_v30, %v2163_v63  ;;  %v2168_v39 = vshll.u32 %v2167_v49, 23 }
 0x262   : > { %v2169_v50 = vor.u32 4788187, %v2168_v39  ;;  %v2172_v11 = vcvt.s32.f32 %v2165_v47 }
 0x264   : > { %v2170_v62 = vand.u32 2147483647, %v2169_v50 }
 0x266   : > { %v2173_v12 = vmul.f32 %v2172_v11, %v2170_v62 }
 0x267   : > { %v2585_v42 = vpop.eup %2584 }
 0x268   : > { %v2587_v57 = vpop.eup %2586  ;;  %v2086_v24 = vxor.u32 2147483648, %v2585_v42  ;;  %v2174_v26 = vxor.u32 2147483648, %v2173_v12 }
 0x269   : > { %v2083_v56 = vxor.u32 2147483648, %v2587_v57 }
 0x26a   : > { %v2087_v54 = vsel %vm2085_vm0, %v2086_v24, %v2587_v57  ;;  %v2175_v46 = vsel %vm2092_vm4, %v2174_v26, %v2173_v12 }
 0x26b   : > { %v2084_v31 = vsel %vm2082_vm1, %v2585_v42, %v2083_v56  ;;  %v2178_v55 = vsel %vm2091_vm5, %v4044_v29, %v2175_v46 }
 0x26c   : > { %v2088_v10 = vsel %vm2081_vm2, %v2084_v31, %v2087_v54  ;;  %2588 = vcosq.f32 %v2178_v55 }
 0x26d   : > { %v2089_v59 = vsel %vm2078_vm3, nan, %v2088_v10  ;;  %2590 = vsinq.f32 %v2178_v55 }
 0x26e   : > { %2198 = vst [vmem:[%s3135_s28 + $0x80] sm:$0xff] %v2089_v59 }
 0x279   : > { %v2589_v14 = vpop.eup %2588 }
 0x27a   : > { %v2591_v33 = vpop.eup %2590  ;;  %v2190_v8 = vxor.u32 2147483648, %v2589_v14 }
 0x27b   : > { %v2187_v18 = vxor.u32 2147483648, %v2591_v33 }
 0x27c   : > { %v2191_v5 = vsel %vm2189_vm6, %v2190_v8, %v2591_v33 }
 0x27d   : > { %v2188_v22 = vsel %vm2186_vm7, %v2589_v14, %v2187_v18 }
 0x27e   : > { %v2192_v58 = vsel %vm2185_vm8, %v2188_v22, %v2191_v5 }
 0x27f   : > { %v2193_v52 = vsel %vm2182_vm9, nan, %v2192_v58 }
 0x280   : > { %2199 = vst [vmem:[%s3135_s28 + $0x88] sm:$0xff] %v2193_v52 }
 0x281   : > { %2605 = shalt.err (!%p2602_p5)
}
 0x282   : > { %s2606_s11 = scalar_lea.hbm %s4323_s6, 2304  ;;  %s2610_s21 = scalar_lea.hbm %s4379_s3, 4608 }
 0x283   : > { %p2607_p6 = scmp.ne.s32.totalorder %s4323_s6, %s2606_s11  ;;  %p2611_p10 = scmp.lt.s32.totalorder %s4323_s6, %s4379_s3 }
 0x284   : > { %p2612_p11 = scmp.lt.s32.totalorder %s2610_s21, %s2606_s11 }
 0x285   : > { %p2608_p7 = pnand %p2607_p6, %p2740_p4 }
 0x286   : > { %p2613_p12 = por %p2612_p11, %p2611_p10 }
 0x287   : > { %p2609_p9 = pneg %p2608_p7 }
 0x289   : > { %p2614_p13 = pnand %p2613_p12, %p2609_p9 }
 0x28b   : > { %2617 = shalt.err (!%p2614_p13)
}
 0x28c   : > { %s2678_s27 = smov 256   ;;  %s2679_s28 = smov 16  }
 0x28d   : > { %2454 = dma.vmem_to_hbm [thread:$0]  (%p2740_p4), %s4325_s30, 2304, %s4323_s6, %s4331_s15, %s2678_s27, %s2678_s27, %s2679_s28  }
 0x28e PF: > { %p2460_p0 = scmp.ge.s32.totalorder %s2668_s17, 2  ;;  %s2231_s29 = sand.u32 1, %s2648_s12  }
 0x28f   : > { %s2232_s4 = scalar_lea.sflag [#allocation3], %s2231_s29 }
 0x290   : > { %p2457_p1 = pnand %p2460_p0, %p2747_p8 }
 0x292   : > { %p2458_p2 = pneg %p2457_p1 }
 0x294   : > { %2643 = dma.done.wait (%p2458_p2), %s2232_s4, 2304  }
 0x295   : > { %2645 = vsyncadd (%p2458_p2), %s2232_s4, 4294964992  ;;  %s16_s17 = sadd.s32 1, %s2668_s17   ;;  %s4414_s12 = smov %s2652_s13 }
 0x296   : > { %p13_p3 = scmp.ge.s32.totalorder %s16_s17, 4   ;;  %s4415_s13 = smov %s2656_s14 }
 0x297   : > { %s4416_s14 = smov %s2753_s25  ;;  %s4417_s15 = smov %s2664_s16 }
 0x298   : > { %s4418_s16 = smov %s4420_s20  ;;  %15 = sbr.rel (!%p13_p3) target bundleno = 4 (0x4), region = 69 }
 0x29d   :  { %2237 = vsyncpa [#allocation3], 1 }
 0x29e   :  { %2239 = vsyncpa [#allocation3 + $0x1], 1 }

</bundles_post_ra>
